<compile_context>
chip_gen: v6e
topology: v6e:2x2x1
jax: 0.10.0
libtpu: 0.0.40
codegen_flags: <defaults>
</compile_context>

<pallas_src>
import functools

import jax
import jax.numpy as jnp
from jax import lax
from jax.experimental import pallas as pl
from jax.experimental.pallas import tpu as pltpu

VMEM_SPEC = pl.BlockSpec(memory_space=pltpu.MemorySpace.VMEM)
SUBLANE = 8


def _gate_perm(H):
    """PyTorch LSTM gate order is [i, f, g, o]; reorder rows to [i, f, o, g] so the
    tanh gate is the last contiguous H-lane block."""
    r = jnp.arange(H)
    return jnp.concatenate([r, r + H, r + 3 * H, r + 2 * H])


# ----------------------------------------------------------------------------
# Fused encoder kernel: embedding + wavefront-scheduled multi-layer LSTM
# ----------------------------------------------------------------------------
def _make_encoder_kernel(T, Bp, H, L):
    N = T * Bp
    H4 = 4 * H

    def kernel(idx_ref, m0_ref, wcomb_ref, bias_ref, hc_ref, gx_ref):
        Vp = m0_ref.shape[0]

        # ---- layer-0 input projection fused with the embedding lookup -------
        # onehot(idx) @ (E @ W_ih0^T + b0)  ==  embed(idx) @ W_ih0^T + b0
        idx = idx_ref[...]                                        # (N, 1) int32
        iota = lax.broadcasted_iota(jnp.int32, (N, Vp), 1)
        onehot = (idx == iota).astype(jnp.bfloat16)               # exact 0/1 in bf16
        gx_ref[...] = jnp.dot(onehot, m0_ref[...],
                              preferred_element_type=jnp.float32)  # (N, 4H) f32

        wcomb = wcomb_ref[...]                                    # (L*H, L*4H) bf16
        bias = bias_ref[...]                                      # (1, L*4H) f32

        h_list = [jnp.zeros((Bp, H), jnp.float32) for _ in range(L)]
        c_list = [jnp.zeros((Bp, H), jnp.float32) for _ in range(L)]

        # Wavefront over layers: at step w, layer l processes time t = w - l.
        # Within a step every layer reads the PRE-step hidden state of the layer
        # below it, which is exactly y_{l-1}[t] in the sequential schedule.
        for w in range(T + L - 1):                                # static unroll (small T)
            active = [l for l in range(L) if 0 <= w - l < T]
            h_all = jnp.concatenate([h.astype(jnp.bfloat16) for h in h_list],
                                    axis=-1)                      # (Bp, L*H) bf16
            gates = jnp.dot(h_all, wcomb,
                            preferred_element_type=jnp.float32) + bias   # (Bp, L*4H)
            if 0 in active:                                       # layer 0 gets its gx slab
                g0 = gates[:, :H4] + gx_ref[w * Bp:(w + 1) * Bp, :]
                gates = g0 if L == 1 else jnp.concatenate([g0, gates[:, H4:]], axis=-1)

            # ONE full-width sigmoid for every gate of every layer; the g-gate
            # columns were pre-scaled by 2 offline so tanh(x) = 2*sigmoid(2x) - 1.
            sig = jax.nn.sigmoid(gates)

            for l in active:
                blk = sig[:, l * H4:(l + 1) * H4]
                i_g = blk[:, 0 * H:1 * H]
                f_g = blk[:, 1 * H:2 * H]
                o_g = blk[:, 2 * H:3 * H]
                g_g = 2.0 * blk[:, 3 * H:4 * H] - 1.0             # tanh via sigmoid
                c_new = f_g * c_list[l] + i_g * g_g
                h_new = o_g * (2.0 * jax.nn.sigmoid(2.0 * c_new) - 1.0)  # tanh(c) via EUP sigmoid
                c_list[l] = c_new
                h_list[l] = h_new

        # packed (h | c) output: one 2H-wide (64-lane) store per layer
        for l in range(L):
            hc_ref[l] = jnp.concatenate([h_list[l], c_list[l]], axis=-1)

    return kernel


# ----------------------------------------------------------------------------
# One-time parameter preprocessing (off the forward hot path)
# ----------------------------------------------------------------------------
def preprocess_params(embed_table, lstm_params):
    """Gate-reorder, g-gate 2x pre-scale, transpose, bias combine, embedding fold,
    vocab sublane padding, block-matrix build, bf16 casts."""
    L = len(lstm_params)
    H = lstm_params[0][1].shape[1]
    H4 = 4 * H
    perm = _gate_perm(H)
    # g-gate pre-scale so the kernel can use a single full-width sigmoid.
    gscale = jnp.concatenate([jnp.ones((3 * H,), jnp.float32),
                              jnp.full((H,), 2.0, jnp.float32)])          # (4H,)

    # Layer 0: fold embedding table and bias into one (V, 4H) projection table.
    w_ih0, w_hh0, b_ih0, b_hh0 = lstm_params[0]
    m0 = (embed_table @ w_ih0[perm].T + (b_ih0 + b_hh0)[perm]) * gscale   # (V, 4H)
    V = m0.shape[0]
    Vp = ((V + SUBLANE - 1) // SUBLANE) * SUBLANE
    m0 = jnp.pad(m0, ((0, Vp - V), (0, 0)))                               # full sublanes

    # Combined wavefront weight matrix:
    #   rows = stacked hidden states [h_0 | ... | h_{L-1}]     (L*H)
    #   cols = stacked gate blocks per layer                   (L*4H)
    #   block (l, l)   = W_hh_l^T   (recurrent path)
    #   block (l-1, l) = W_ih_l^T   (input from the layer below, l >= 1)
    wcomb = jnp.zeros((L * H, L * H4), jnp.float32)
    bias = jnp.zeros((1, L * H4), jnp.float32)
    for l in range(L):
        w_ih, w_hh, b_ih, b_hh = lstm_params[l]
        wcomb = wcomb.at[l * H:(l + 1) * H, l * H4:(l + 1) * H4].set(w_hh[perm].T * gscale)
        if l > 0:
            wcomb = wcomb.at[(l - 1) * H:l * H, l * H4:(l + 1) * H4].set(w_ih[perm].T * gscale)
            bias = bias.at[0, l * H4:(l + 1) * H4].set((b_ih + b_hh)[perm] * gscale)

    return (m0.astype(jnp.bfloat16),          # (Vp, 4H)   bf16 MXU operand
            wcomb.astype(jnp.bfloat16),       # (L*H, L*4H) bf16 MXU operand
            bias.astype(jnp.float32))         # (1, L*4H)  f32 post-matmul add


# ----------------------------------------------------------------------------
# Encoder forward: one pallas_call
# ----------------------------------------------------------------------------
@functools.partial(jax.jit, static_argnames=("num_layers",))
def encoder_forward(x_tokens, prepped, num_layers):
    T, B = x_tokens.shape
    m0, wcomb, bias = prepped
    L = num_layers
    H = wcomb.shape[0] // L
    Bp = ((B + SUBLANE - 1) // SUBLANE) * SUBLANE   # full sublanes in the hot loop

    idx = x_tokens.astype(jnp.int32)
    if Bp != B:
        # padded rows use token 0; the recurrence is row-wise so they never
        # contaminate real rows and are sliced off below.
        idx = jnp.pad(idx, ((0, 0), (0, Bp - B)))
    idx_flat = idx.reshape(T * Bp, 1)

    kernel = _make_encoder_kernel(T, Bp, H, L)
    hc = pl.pallas_call(
        kernel,
        out_shape=jax.ShapeDtypeStruct((L, Bp, 2 * H), jnp.float32),
        in_specs=[VMEM_SPEC] * 4,
        out_specs=VMEM_SPEC,
        scratch_shapes=[pltpu.VMEM((T * Bp, 4 * H), jnp.float32)],  # layer-0 G_x
    )(idx_flat, m0, wcomb, bias)
    return hc[:, :B, :H], hc[:, :B, H:]


# ----------------------------------------------------------------------------
# Pure-JAX reference (PyTorch semantics, original [i,f,g,o] gate order, f32)
# ----------------------------------------------------------------------------
def encoder_reference(x_tokens, embed_table, lstm_params, num_layers):
    emb = embed_table[x_tokens]                      # (T, B, E); dropout = identity (eval)
    T, B, _ = emb.shape
    layer_in = emb
    h_list, c_list = [], []
    for l in range(num_layers):
        w_ih, w_hh, b_ih, b_hh = lstm_params[l]
        H = w_hh.shape[1]
        h = jnp.zeros((B, H), jnp.float32)
        c = jnp.zeros((B, H), jnp.float32)
        ys = []
        for t in range(T):
            gates = layer_in[t] @ w_ih.T + b_ih + h @ w_hh.T + b_hh
            i_g = jax.nn.sigmoid(gates[:, 0 * H:1 * H])
            f_g = jax.nn.sigmoid(gates[:, 1 * H:2 * H])
            g_g = jnp.tanh(gates[:, 2 * H:3 * H])
            o_g = jax.nn.sigmoid(gates[:, 3 * H:4 * H])
            c = f_g * c + i_g * g_g
            h = o_g * jnp.tanh(c)
            ys.append(h)
        layer_in = jnp.stack(ys, axis=0)
        h_list.append(h)
        c_list.append(c)
    return jnp.stack(h_list, axis=0), jnp.stack(c_list, axis=0)


# ----------------------------------------------------------------------------
# Deterministic parameter init (shapes match nn.Embedding / nn.LSTM)
# ----------------------------------------------------------------------------
def init_params(key, input_size, embed_dims, hidden_size, num_layers):
    k_embed, key = jax.random.split(key)
    embed_table = jax.random.normal(k_embed, (input_size, embed_dims), jnp.float32)
    bound = 1.0 / jnp.sqrt(hidden_size)
    lstm_params = []
    for l in range(num_layers):
        in_dim = embed_dims if l == 0 else hidden_size
        key, k1, k2, k3, k4 = jax.random.split(key, 5)
        w_ih = jax.random.uniform(k1, (4 * hidden_size, in_dim), jnp.float32, -bound, bound)
        w_hh = jax.random.uniform(k2, (4 * hidden_size, hidden_size), jnp.float32, -bound, bound)
        b_ih = jax.random.uniform(k3, (4 * hidden_size,), jnp.float32, -bound, bound)
        b_hh = jax.random.uniform(k4, (4 * hidden_size,), jnp.float32, -bound, bound)
        lstm_params.append((w_ih, w_hh, b_ih, b_hh))
    return embed_table, tuple(lstm_params)


if __name__ == "__main__":
    input_size = 50      # vocab
    embed_dims = 16
    hidden_size = 32
    num_layers = 2
    seq_len = 8
    batch = 4

    key = jax.random.PRNGKey(0)
    k_tok, k_par = jax.random.split(key)
    x_tokens = jax.random.randint(k_tok, (seq_len, batch), 0, input_size, jnp.int32)
    embed_table, lstm_params = init_params(k_par, input_size, embed_dims,
                                           hidden_size, num_layers)

    # One-time weight preprocessing (gate reorder / g-gate 2x scale / transpose /
    # embedding fusion / block-matrix build / bf16 cast).
    prepped = jax.block_until_ready(preprocess_params(embed_table, lstm_params))

    h, c = encoder_forward(x_tokens, prepped, num_layers)
    h, c = jax.block_until_ready((h, c))

    h_ref, c_ref = encoder_reference(x_tokens, embed_table, lstm_params, num_layers)
    assert h.shape == (num_layers, batch, hidden_size)
    assert c.shape == (num_layers, batch, hidden_size)
    # Tolerance loosened vs. the f32-only version: MXU operands are bf16
    # (f32 accumulation) and tanh is computed via the sigmoid identity.
    assert jnp.allclose(h, h_ref, atol=5e-2, rtol=5e-2), float(jnp.max(jnp.abs(h - h_ref)))
    assert jnp.allclose(c, c_ref, atol=5e-2, rtol=5e-2), float(jnp.max(jnp.abs(c - c_ref)))
    print("KERNEL_OK")
</pallas_src>

<mosaic_0001>
module attributes {stable_mosaic.version = 11 : i64} {
  func.func @kernel(%arg0: memref<64x1xi32, #tpu.memory_space<vmem>>, %arg1: memref<56x128xbf16, #tpu.memory_space<vmem>>, %arg2: memref<64x256xbf16, #tpu.memory_space<vmem>>, %arg3: memref<1x256xf32, #tpu.memory_space<vmem>>, %arg4: memref<2x8x64xf32, #tpu.memory_space<vmem>>, %arg5: memref<64x128xf32, #tpu.memory_space<vmem>>) attributes {dimension_semantics = [], scalar_prefetch = 0 : i64, scratch_operands = 1 : i64, tpu.core_type = #tpu.core_type<tc>} {
    %c0 = arith.constant 0 : index
    %c0_0 = arith.constant 0 : index
    %0 = vector.load %arg0[%c0, %c0_0] : memref<64x1xi32, #tpu.memory_space<vmem>>, vector<64x1xi32>
    %1 = tpu.iota {dimensions = array<i32: 1>} : vector<64x56xi32>
    %2 = vector.broadcast %0 : vector<64x1xi32> to vector<64x56xi32>
    %3 = arith.cmpi eq, %2, %1 : vector<64x56xi32>
    %4 = arith.extui %3 : vector<64x56xi1> to vector<64x56xi32>
    %5 = arith.sitofp %4 : vector<64x56xi32> to vector<64x56xf32>
    %6 = arith.truncf %5 : vector<64x56xf32> to vector<64x56xbf16>
    %c0_1 = arith.constant 0 : index
    %c0_2 = arith.constant 0 : index
    %7 = vector.load %arg1[%c0_1, %c0_2] : memref<56x128xbf16, #tpu.memory_space<vmem>>, vector<56x128xbf16>
    %cst = arith.constant dense<0.000000e+00> : vector<64x128xf32>
    %8 = tpu.matmul %6, %7, %cst {dimension_numbers = #tpu.dot_dimension_numbers<[1], [0], [0], [1], [0, 0, 1, 1], [], []>} : vector<64x56xbf16>, vector<56x128xbf16>, vector<64x128xf32> -> vector<64x128xf32>
    %c0_3 = arith.constant 0 : index
    %c0_4 = arith.constant 0 : index
    %9 = vector.load %arg5[%c0_3, %c0_4] : memref<64x128xf32, #tpu.memory_space<vmem>>, vector<64x128xf32>
    tpu.vector_store %arg5[%c0_3, %c0_4], %8 {strides = array<i32>} : memref<64x128xf32, #tpu.memory_space<vmem>>, vector<64x128xf32>,
    %c0_5 = arith.constant 0 : index
    %c0_6 = arith.constant 0 : index
    %10 = vector.load %arg2[%c0_5, %c0_6] : memref<64x256xbf16, #tpu.memory_space<vmem>>, vector<64x256xbf16>
    %c0_7 = arith.constant 0 : index
    %c0_8 = arith.constant 0 : index
    %11 = vector.load %arg3[%c0_7, %c0_8] : memref<1x256xf32, #tpu.memory_space<vmem>>, vector<1x256xf32>
    %cst_9 = arith.constant 0.000000e+00 : f32
    %12 = vector.broadcast %cst_9 : f32 to vector<8x32xf32>
    %cst_10 = arith.constant 0.000000e+00 : f32
    %13 = vector.broadcast %cst_10 : f32 to vector<8x32xf32>
    %cst_11 = arith.constant 0.000000e+00 : f32
    %14 = vector.broadcast %cst_11 : f32 to vector<8x32xf32>
    %cst_12 = arith.constant 0.000000e+00 : f32
    %15 = vector.broadcast %cst_12 : f32 to vector<8x32xf32>
    %16 = arith.truncf %12 : vector<8x32xf32> to vector<8x32xbf16>
    %17 = arith.truncf %13 : vector<8x32xf32> to vector<8x32xbf16>
    %18 = tpu.concatenate %16, %17 in 1 : vector<8x32xbf16>, vector<8x32xbf16> -> vector<8x64xbf16>
    %cst_13 = arith.constant dense<0.000000e+00> : vector<8x256xf32>
    %19 = tpu.matmul %18, %10, %cst_13 {dimension_numbers = #tpu.dot_dimension_numbers<[1], [0], [0], [1], [0, 0, 1, 1], [], []>} : vector<8x64xbf16>, vector<64x256xbf16>, vector<8x256xf32> -> vector<8x256xf32>
    %20 = vector.broadcast %11 : vector<1x256xf32> to vector<8x256xf32>
    %21 = arith.addf %19, %20 : vector<8x256xf32>
    %22 = vector.extract_strided_slice %21 {offsets = [0, 0], sizes = [8, 128], strides = [1, 1]} : vector<8x256xf32> to vector<8x128xf32>
    %c0_14 = arith.constant 0 : index
    %c0_15 = arith.constant 0 : index
    %23 = vector.load %arg5[%c0_14, %c0_15] : memref<64x128xf32, #tpu.memory_space<vmem>>, vector<8x128xf32>
    %24 = arith.addf %22, %23 : vector<8x128xf32>
    %25 = vector.extract_strided_slice %21 {offsets = [0, 128], sizes = [8, 128], strides = [1, 1]} : vector<8x256xf32> to vector<8x128xf32>
    %26 = tpu.concatenate %24, %25 in 1 : vector<8x128xf32>, vector<8x128xf32> -> vector<8x256xf32>
    %27 = arith.negf %26 : vector<8x256xf32>
    %28 = math.exp %27 : vector<8x256xf32>
    %cst_16 = arith.constant 1.000000e+00 : f32
    %29 = vector.broadcast %cst_16 : f32 to vector<8x256xf32>
    %30 = arith.addf %29, %28 : vector<8x256xf32>
    %31 = arith.divf %29, %30 : vector<8x256xf32>
    %32 = vector.extract_strided_slice %31 {offsets = [0, 0], sizes = [8, 128], strides = [1, 1]} : vector<8x256xf32> to vector<8x128xf32>
    %33 = vector.extract_strided_slice %32 {offsets = [0, 0], sizes = [8, 32], strides = [1, 1]} : vector<8x128xf32> to vector<8x32xf32>
    %34 = vector.extract_strided_slice %32 {offsets = [0, 32], sizes = [8, 32], strides = [1, 1]} : vector<8x128xf32> to vector<8x32xf32>
    %35 = vector.extract_strided_slice %32 {offsets = [0, 64], sizes = [8, 32], strides = [1, 1]} : vector<8x128xf32> to vector<8x32xf32>
    %36 = vector.extract_strided_slice %32 {offsets = [0, 96], sizes = [8, 32], strides = [1, 1]} : vector<8x128xf32> to vector<8x32xf32>
    %cst_17 = arith.constant 2.000000e+00 : f32
    %37 = vector.broadcast %cst_17 : f32 to vector<8x32xf32>
    %38 = arith.mulf %37, %36 : vector<8x32xf32>
    %cst_18 = arith.constant 1.000000e+00 : f32
    %39 = vector.broadcast %cst_18 : f32 to vector<8x32xf32>
    %40 = arith.subf %38, %39 : vector<8x32xf32>
    %41 = arith.mulf %34, %14 : vector<8x32xf32>
    %42 = arith.mulf %33, %40 : vector<8x32xf32>
    %43 = arith.addf %41, %42 : vector<8x32xf32>
    %cst_19 = arith.constant 2.000000e+00 : f32
    %44 = vector.broadcast %cst_19 : f32 to vector<8x32xf32>
    %45 = arith.mulf %44, %43 : vector<8x32xf32>
    %46 = arith.negf %45 : vector<8x32xf32>
    %47 = math.exp %46 : vector<8x32xf32>
    %cst_20 = arith.constant 1.000000e+00 : f32
    %48 = vector.broadcast %cst_20 : f32 to vector<8x32xf32>
    %49 = arith.addf %48, %47 : vector<8x32xf32>
    %50 = arith.divf %48, %49 : vector<8x32xf32>
    %cst_21 = arith.constant 2.000000e+00 : f32
    %51 = vector.broadcast %cst_21 : f32 to vector<8x32xf32>
    %52 = arith.mulf %51, %50 : vector<8x32xf32>
    %cst_22 = arith.constant 1.000000e+00 : f32
    %53 = vector.broadcast %cst_22 : f32 to vector<8x32xf32>
    %54 = arith.subf %52, %53 : vector<8x32xf32>
    %55 = arith.mulf %35, %54 : vector<8x32xf32>
    %56 = arith.truncf %55 : vector<8x32xf32> to vector<8x32xbf16>
    %57 = arith.truncf %13 : vector<8x32xf32> to vector<8x32xbf16>
    %58 = tpu.concatenate %56, %57 in 1 : vector<8x32xbf16>, vector<8x32xbf16> -> vector<8x64xbf16>
    %cst_23 = arith.constant dense<0.000000e+00> : vector<8x256xf32>
    %59 = tpu.matmul %58, %10, %cst_23 {dimension_numbers = #tpu.dot_dimension_numbers<[1], [0], [0], [1], [0, 0, 1, 1], [], []>} : vector<8x64xbf16>, vector<64x256xbf16>, vector<8x256xf32> -> vector<8x256xf32>
    %60 = vector.broadcast %11 : vector<1x256xf32> to vector<8x256xf32>
    %61 = arith.addf %59, %60 : vector<8x256xf32>
    %62 = vector.extract_strided_slice %61 {offsets = [0, 0], sizes = [8, 128], strides = [1, 1]} : vector<8x256xf32> to vector<8x128xf32>
    %c8 = arith.constant 8 : index
    %c0_24 = arith.constant 0 : index
    %63 = vector.load %arg5[%c8, %c0_24] : memref<64x128xf32, #tpu.memory_space<vmem>>, vector<8x128xf32>
    %64 = arith.addf %62, %63 : vector<8x128xf32>
    %65 = vector.extract_strided_slice %61 {offsets = [0, 128], sizes = [8, 128], strides = [1, 1]} : vector<8x256xf32> to vector<8x128xf32>
    %66 = tpu.concatenate %64, %65 in 1 : vector<8x128xf32>, vector<8x128xf32> -> vector<8x256xf32>
    %67 = arith.negf %66 : vector<8x256xf32>
    %68 = math.exp %67 : vector<8x256xf32>
    %cst_25 = arith.constant 1.000000e+00 : f32
    %69 = vector.broadcast %cst_25 : f32 to vector<8x256xf32>
    %70 = arith.addf %69, %68 : vector<8x256xf32>
    %71 = arith.divf %69, %70 : vector<8x256xf32>
    %72 = vector.extract_strided_slice %71 {offsets = [0, 0], sizes = [8, 128], strides = [1, 1]} : vector<8x256xf32> to vector<8x128xf32>
    %73 = vector.extract_strided_slice %72 {offsets = [0, 0], sizes = [8, 32], strides = [1, 1]} : vector<8x128xf32> to vector<8x32xf32>
    %74 = vector.extract_strided_slice %72 {offsets = [0, 32], sizes = [8, 32], strides = [1, 1]} : vector<8x128xf32> to vector<8x32xf32>
    %75 = vector.extract_strided_slice %72 {offsets = [0, 64], sizes = [8, 32], strides = [1, 1]} : vector<8x128xf32> to vector<8x32xf32>
    %76 = vector.extract_strided_slice %72 {offsets = [0, 96], sizes = [8, 32], strides = [1, 1]} : vector<8x128xf32> to vector<8x32xf32>
    %cst_26 = arith.constant 2.000000e+00 : f32
    %77 = vector.broadcast %cst_26 : f32 to vector<8x32xf32>
    %78 = arith.mulf %77, %76 : vector<8x32xf32>
    %cst_27 = arith.constant 1.000000e+00 : f32
    %79 = vector.broadcast %cst_27 : f32 to vector<8x32xf32>
    %80 = arith.subf %78, %79 : vector<8x32xf32>
    %81 = arith.mulf %74, %43 : vector<8x32xf32>
    %82 = arith.mulf %73, %80 : vector<8x32xf32>
    %83 = arith.addf %81, %82 : vector<8x32xf32>
    %cst_28 = arith.constant 2.000000e+00 : f32
    %84 = vector.broadcast %cst_28 : f32 to vector<8x32xf32>
    %85 = arith.mulf %84, %83 : vector<8x32xf32>
    %86 = arith.negf %85 : vector<8x32xf32>
    %87 = math.exp %86 : vector<8x32xf32>
    %cst_29 = arith.constant 1.000000e+00 : f32
    %88 = vector.broadcast %cst_29 : f32 to vector<8x32xf32>
    %89 = arith.addf %88, %87 : vector<8x32xf32>
    %90 = arith.divf %88, %89 : vector<8x32xf32>
    %cst_30 = arith.constant 2.000000e+00 : f32
    %91 = vector.broadcast %cst_30 : f32 to vector<8x32xf32>
    %92 = arith.mulf %91, %90 : vector<8x32xf32>
    %cst_31 = arith.constant 1.000000e+00 : f32
    %93 = vector.broadcast %cst_31 : f32 to vector<8x32xf32>
    %94 = arith.subf %92, %93 : vector<8x32xf32>
    %95 = arith.mulf %75, %94 : vector<8x32xf32>
    %96 = vector.extract_strided_slice %71 {offsets = [0, 128], sizes = [8, 128], strides = [1, 1]} : vector<8x256xf32> to vector<8x128xf32>
    %97 = vector.extract_strided_slice %96 {offsets = [0, 0], sizes = [8, 32], strides = [1, 1]} : vector<8x128xf32> to vector<8x32xf32>
    %98 = vector.extract_strided_slice %96 {offsets = [0, 32], sizes = [8, 32], strides = [1, 1]} : vector<8x128xf32> to vector<8x32xf32>
    %99 = vector.extract_strided_slice %96 {offsets = [0, 64], sizes = [8, 32], strides = [1, 1]} : vector<8x128xf32> to vector<8x32xf32>
    %100 = vector.extract_strided_slice %96 {offsets = [0, 96], sizes = [8, 32], strides = [1, 1]} : vector<8x128xf32> to vector<8x32xf32>
    %cst_32 = arith.constant 2.000000e+00 : f32
    %101 = vector.broadcast %cst_32 : f32 to vector<8x32xf32>
    %102 = arith.mulf %101, %100 : vector<8x32xf32>
    %cst_33 = arith.constant 1.000000e+00 : f32
    %103 = vector.broadcast %cst_33 : f32 to vector<8x32xf32>
    %104 = arith.subf %102, %103 : vector<8x32xf32>
    %105 = arith.mulf %98, %15 : vector<8x32xf32>
    %106 = arith.mulf %97, %104 : vector<8x32xf32>
    %107 = arith.addf %105, %106 : vector<8x32xf32>
    %cst_34 = arith.constant 2.000000e+00 : f32
    %108 = vector.broadcast %cst_34 : f32 to vector<8x32xf32>
    %109 = arith.mulf %108, %107 : vector<8x32xf32>
    %110 = arith.negf %109 : vector<8x32xf32>
    %111 = math.exp %110 : vector<8x32xf32>
    %cst_35 = arith.constant 1.000000e+00 : f32
    %112 = vector.broadcast %cst_35 : f32 to vector<8x32xf32>
    %113 = arith.addf %112, %111 : vector<8x32xf32>
    %114 = arith.divf %112, %113 : vector<8x32xf32>
    %cst_36 = arith.constant 2.000000e+00 : f32
    %115 = vector.broadcast %cst_36 : f32 to vector<8x32xf32>
    %116 = arith.mulf %115, %114 : vector<8x32xf32>
    %cst_37 = arith.constant 1.000000e+00 : f32
    %117 = vector.broadcast %cst_37 : f32 to vector<8x32xf32>
    %118 = arith.subf %116, %117 : vector<8x32xf32>
    %119 = arith.mulf %99, %118 : vector<8x32xf32>
    %120 = arith.truncf %95 : vector<8x32xf32> to vector<8x32xbf16>
    %121 = arith.truncf %119 : vector<8x32xf32> to vector<8x32xbf16>
    %122 = tpu.concatenate %120, %121 in 1 : vector<8x32xbf16>, vector<8x32xbf16> -> vector<8x64xbf16>
    %cst_38 = arith.constant dense<0.000000e+00> : vector<8x256xf32>
    %123 = tpu.matmul %122, %10, %cst_38 {dimension_numbers = #tpu.dot_dimension_numbers<[1], [0], [0], [1], [0, 0, 1, 1], [], []>} : vector<8x64xbf16>, vector<64x256xbf16>, vector<8x256xf32> -> vector<8x256xf32>
    %124 = vector.broadcast %11 : vector<1x256xf32> to vector<8x256xf32>
    %125 = arith.addf %123, %124 : vector<8x256xf32>
    %126 = vector.extract_strided_slice %125 {offsets = [0, 0], sizes = [8, 128], strides = [1, 1]} : vector<8x256xf32> to vector<8x128xf32>
    %c16 = arith.constant 16 : index
    %c0_39 = arith.constant 0 : index
    %127 = vector.load %arg5[%c16, %c0_39] : memref<64x128xf32, #tpu.memory_space<vmem>>, vector<8x128xf32>
    %128 = arith.addf %126, %127 : vector<8x128xf32>
    %129 = vector.extract_strided_slice %125 {offsets = [0, 128], sizes = [8, 128], strides = [1, 1]} : vector<8x256xf32> to vector<8x128xf32>
    %130 = tpu.concatenate %128, %129 in 1 : vector<8x128xf32>, vector<8x128xf32> -> vector<8x256xf32>
    %131 = arith.negf %130 : vector<8x256xf32>
    %132 = math.exp %131 : vector<8x256xf32>
    %cst_40 = arith.constant 1.000000e+00 : f32
    %133 = vector.broadcast %cst_40 : f32 to vector<8x256xf32>
    %134 = arith.addf %133, %132 : vector<8x256xf32>
    %135 = arith.divf %133, %134 : vector<8x256xf32>
    %136 = vector.extract_strided_slice %135 {offsets = [0, 0], sizes = [8, 128], strides = [1, 1]} : vector<8x256xf32> to vector<8x128xf32>
    %137 = vector.extract_strided_slice %136 {offsets = [0, 0], sizes = [8, 32], strides = [1, 1]} : vector<8x128xf32> to vector<8x32xf32>
    %138 = vector.extract_strided_slice %136 {offsets = [0, 32], sizes = [8, 32], strides = [1, 1]} : vector<8x128xf32> to vector<8x32xf32>
    %139 = vector.extract_strided_slice %136 {offsets = [0, 64], sizes = [8, 32], strides = [1, 1]} : vector<8x128xf32> to vector<8x32xf32>
    %140 = vector.extract_strided_slice %136 {offsets = [0, 96], sizes = [8, 32], strides = [1, 1]} : vector<8x128xf32> to vector<8x32xf32>
    %cst_41 = arith.constant 2.000000e+00 : f32
    %141 = vector.broadcast %cst_41 : f32 to vector<8x32xf32>
    %142 = arith.mulf %141, %140 : vector<8x32xf32>
    %cst_42 = arith.constant 1.000000e+00 : f32
    %143 = vector.broadcast %cst_42 : f32 to vector<8x32xf32>
    %144 = arith.subf %142, %143 : vector<8x32xf32>
    %145 = arith.mulf %138, %83 : vector<8x32xf32>
    %146 = arith.mulf %137, %144 : vector<8x32xf32>
    %147 = arith.addf %145, %146 : vector<8x32xf32>
    %cst_43 = arith.constant 2.000000e+00 : f32
    %148 = vector.broadcast %cst_43 : f32 to vector<8x32xf32>
    %149 = arith.mulf %148, %147 : vector<8x32xf32>
    %150 = arith.negf %149 : vector<8x32xf32>
    %151 = math.exp %150 : vector<8x32xf32>
    %cst_44 = arith.constant 1.000000e+00 : f32
    %152 = vector.broadcast %cst_44 : f32 to vector<8x32xf32>
    %153 = arith.addf %152, %151 : vector<8x32xf32>
    %154 = arith.divf %152, %153 : vector<8x32xf32>
    %cst_45 = arith.constant 2.000000e+00 : f32
    %155 = vector.broadcast %cst_45 : f32 to vector<8x32xf32>
    %156 = arith.mulf %155, %154 : vector<8x32xf32>
    %cst_46 = arith.constant 1.000000e+00 : f32
    %157 = vector.broadcast %cst_46 : f32 to vector<8x32xf32>
    %158 = arith.subf %156, %157 : vector<8x32xf32>
    %159 = arith.mulf %139, %158 : vector<8x32xf32>
    %160 = vector.extract_strided_slice %135 {offsets = [0, 128], sizes = [8, 128], strides = [1, 1]} : vector<8x256xf32> to vector<8x128xf32>
    %161 = vector.extract_strided_slice %160 {offsets = [0, 0], sizes = [8, 32], strides = [1, 1]} : vector<8x128xf32> to vector<8x32xf32>
    %162 = vector.extract_strided_slice %160 {offsets = [0, 32], sizes = [8, 32], strides = [1, 1]} : vector<8x128xf32> to vector<8x32xf32>
    %163 = vector.extract_strided_slice %160 {offsets = [0, 64], sizes = [8, 32], strides = [1, 1]} : vector<8x128xf32> to vector<8x32xf32>
    %164 = vector.extract_strided_slice %160 {offsets = [0, 96], sizes = [8, 32], strides = [1, 1]} : vector<8x128xf32> to vector<8x32xf32>
    %cst_47 = arith.constant 2.000000e+00 : f32
    %165 = vector.broadcast %cst_47 : f32 to vector<8x32xf32>
    %166 = arith.mulf %165, %164 : vector<8x32xf32>
    %cst_48 = arith.constant 1.000000e+00 : f32
    %167 = vector.broadcast %cst_48 : f32 to vector<8x32xf32>
    %168 = arith.subf %166, %167 : vector<8x32xf32>
    %169 = arith.mulf %162, %107 : vector<8x32xf32>
    %170 = arith.mulf %161, %168 : vector<8x32xf32>
    %171 = arith.addf %169, %170 : vector<8x32xf32>
    %cst_49 = arith.constant 2.000000e+00 : f32
    %172 = vector.broadcast %cst_49 : f32 to vector<8x32xf32>
    %173 = arith.mulf %172, %171 : vector<8x32xf32>
    %174 = arith.negf %173 : vector<8x32xf32>
    %175 = math.exp %174 : vector<8x32xf32>
    %cst_50 = arith.constant 1.000000e+00 : f32
    %176 = vector.broadcast %cst_50 : f32 to vector<8x32xf32>
    %177 = arith.addf %176, %175 : vector<8x32xf32>
    %178 = arith.divf %176, %177 : vector<8x32xf32>
    %cst_51 = arith.constant 2.000000e+00 : f32
    %179 = vector.broadcast %cst_51 : f32 to vector<8x32xf32>
    %180 = arith.mulf %179, %178 : vector<8x32xf32>
    %cst_52 = arith.constant 1.000000e+00 : f32
    %181 = vector.broadcast %cst_52 : f32 to vector<8x32xf32>
    %182 = arith.subf %180, %181 : vector<8x32xf32>
    %183 = arith.mulf %163, %182 : vector<8x32xf32>
    %184 = arith.truncf %159 : vector<8x32xf32> to vector<8x32xbf16>
    %185 = arith.truncf %183 : vector<8x32xf32> to vector<8x32xbf16>
    %186 = tpu.concatenate %184, %185 in 1 : vector<8x32xbf16>, vector<8x32xbf16> -> vector<8x64xbf16>
    %cst_53 = arith.constant dense<0.000000e+00> : vector<8x256xf32>
    %187 = tpu.matmul %186, %10, %cst_53 {dimension_numbers = #tpu.dot_dimension_numbers<[1], [0], [0], [1], [0, 0, 1, 1], [], []>} : vector<8x64xbf16>, vector<64x256xbf16>, vector<8x256xf32> -> vector<8x256xf32>
    %188 = vector.broadcast %11 : vector<1x256xf32> to vector<8x256xf32>
    %189 = arith.addf %187, %188 : vector<8x256xf32>
    %190 = vector.extract_strided_slice %189 {offsets = [0, 0], sizes = [8, 128], strides = [1, 1]} : vector<8x256xf32> to vector<8x128xf32>
    %c24 = arith.constant 24 : index
    %c0_54 = arith.constant 0 : index
    %191 = vector.load %arg5[%c24, %c0_54] : memref<64x128xf32, #tpu.memory_space<vmem>>, vector<8x128xf32>
    %192 = arith.addf %190, %191 : vector<8x128xf32>
    %193 = vector.extract_strided_slice %189 {offsets = [0, 128], sizes = [8, 128], strides = [1, 1]} : vector<8x256xf32> to vector<8x128xf32>
    %194 = tpu.concatenate %192, %193 in 1 : vector<8x128xf32>, vector<8x128xf32> -> vector<8x256xf32>
    %195 = arith.negf %194 : vector<8x256xf32>
    %196 = math.exp %195 : vector<8x256xf32>
    %cst_55 = arith.constant 1.000000e+00 : f32
    %197 = vector.broadcast %cst_55 : f32 to vector<8x256xf32>
    %198 = arith.addf %197, %196 : vector<8x256xf32>
    %199 = arith.divf %197, %198 : vector<8x256xf32>
    %200 = vector.extract_strided_slice %199 {offsets = [0, 0], sizes = [8, 128], strides = [1, 1]} : vector<8x256xf32> to vector<8x128xf32>
    %201 = vector.extract_strided_slice %200 {offsets = [0, 0], sizes = [8, 32], strides = [1, 1]} : vector<8x128xf32> to vector<8x32xf32>
    %202 = vector.extract_strided_slice %200 {offsets = [0, 32], sizes = [8, 32], strides = [1, 1]} : vector<8x128xf32> to vector<8x32xf32>
    %203 = vector.extract_strided_slice %200 {offsets = [0, 64], sizes = [8, 32], strides = [1, 1]} : vector<8x128xf32> to vector<8x32xf32>
    %204 = vector.extract_strided_slice %200 {offsets = [0, 96], sizes = [8, 32], strides = [1, 1]} : vector<8x128xf32> to vector<8x32xf32>
    %cst_56 = arith.constant 2.000000e+00 : f32
    %205 = vector.broadcast %cst_56 : f32 to vector<8x32xf32>
    %206 = arith.mulf %205, %204 : vector<8x32xf32>
    %cst_57 = arith.constant 1.000000e+00 : f32
    %207 = vector.broadcast %cst_57 : f32 to vector<8x32xf32>
    %208 = arith.subf %206, %207 : vector<8x32xf32>
    %209 = arith.mulf %202, %147 : vector<8x32xf32>
    %210 = arith.mulf %201, %208 : vector<8x32xf32>
    %211 = arith.addf %209, %210 : vector<8x32xf32>
    %cst_58 = arith.constant 2.000000e+00 : f32
    %212 = vector.broadcast %cst_58 : f32 to vector<8x32xf32>
    %213 = arith.mulf %212, %211 : vector<8x32xf32>
    %214 = arith.negf %213 : vector<8x32xf32>
    %215 = math.exp %214 : vector<8x32xf32>
    %cst_59 = arith.constant 1.000000e+00 : f32
    %216 = vector.broadcast %cst_59 : f32 to vector<8x32xf32>
    %217 = arith.addf %216, %215 : vector<8x32xf32>
    %218 = arith.divf %216, %217 : vector<8x32xf32>
    %cst_60 = arith.constant 2.000000e+00 : f32
    %219 = vector.broadcast %cst_60 : f32 to vector<8x32xf32>
    %220 = arith.mulf %219, %218 : vector<8x32xf32>
    %cst_61 = arith.constant 1.000000e+00 : f32
    %221 = vector.broadcast %cst_61 : f32 to vector<8x32xf32>
    %222 = arith.subf %220, %221 : vector<8x32xf32>
    %223 = arith.mulf %203, %222 : vector<8x32xf32>
    %224 = vector.extract_strided_slice %199 {offsets = [0, 128], sizes = [8, 128], strides = [1, 1]} : vector<8x256xf32> to vector<8x128xf32>
    %225 = vector.extract_strided_slice %224 {offsets = [0, 0], sizes = [8, 32], strides = [1, 1]} : vector<8x128xf32> to vector<8x32xf32>
    %226 = vector.extract_strided_slice %224 {offsets = [0, 32], sizes = [8, 32], strides = [1, 1]} : vector<8x128xf32> to vector<8x32xf32>
    %227 = vector.extract_strided_slice %224 {offsets = [0, 64], sizes = [8, 32], strides = [1, 1]} : vector<8x128xf32> to vector<8x32xf32>
    %228 = vector.extract_strided_slice %224 {offsets = [0, 96], sizes = [8, 32], strides = [1, 1]} : vector<8x128xf32> to vector<8x32xf32>
    %cst_62 = arith.constant 2.000000e+00 : f32
    %229 = vector.broadcast %cst_62 : f32 to vector<8x32xf32>
    %230 = arith.mulf %229, %228 : vector<8x32xf32>
    %cst_63 = arith.constant 1.000000e+00 : f32
    %231 = vector.broadcast %cst_63 : f32 to vector<8x32xf32>
    %232 = arith.subf %230, %231 : vector<8x32xf32>
    %233 = arith.mulf %226, %171 : vector<8x32xf32>
    %234 = arith.mulf %225, %232 : vector<8x32xf32>
    %235 = arith.addf %233, %234 : vector<8x32xf32>
    %cst_64 = arith.constant 2.000000e+00 : f32
    %236 = vector.broadcast %cst_64 : f32 to vector<8x32xf32>
    %237 = arith.mulf %236, %235 : vector<8x32xf32>
    %238 = arith.negf %237 : vector<8x32xf32>
    %239 = math.exp %238 : vector<8x32xf32>
    %cst_65 = arith.constant 1.000000e+00 : f32
    %240 = vector.broadcast %cst_65 : f32 to vector<8x32xf32>
    %241 = arith.addf %240, %239 : vector<8x32xf32>
    %242 = arith.divf %240, %241 : vector<8x32xf32>
    %cst_66 = arith.constant 2.000000e+00 : f32
    %243 = vector.broadcast %cst_66 : f32 to vector<8x32xf32>
    %244 = arith.mulf %243, %242 : vector<8x32xf32>
    %cst_67 = arith.constant 1.000000e+00 : f32
    %245 = vector.broadcast %cst_67 : f32 to vector<8x32xf32>
    %246 = arith.subf %244, %245 : vector<8x32xf32>
    %247 = arith.mulf %227, %246 : vector<8x32xf32>
    %248 = arith.truncf %223 : vector<8x32xf32> to vector<8x32xbf16>
    %249 = arith.truncf %247 : vector<8x32xf32> to vector<8x32xbf16>
    %250 = tpu.concatenate %248, %249 in 1 : vector<8x32xbf16>, vector<8x32xbf16> -> vector<8x64xbf16>
    %cst_68 = arith.constant dense<0.000000e+00> : vector<8x256xf32>
    %251 = tpu.matmul %250, %10, %cst_68 {dimension_numbers = #tpu.dot_dimension_numbers<[1], [0], [0], [1], [0, 0, 1, 1], [], []>} : vector<8x64xbf16>, vector<64x256xbf16>, vector<8x256xf32> -> vector<8x256xf32>
    %252 = vector.broadcast %11 : vector<1x256xf32> to vector<8x256xf32>
    %253 = arith.addf %251, %252 : vector<8x256xf32>
    %254 = vector.extract_strided_slice %253 {offsets = [0, 0], sizes = [8, 128], strides = [1, 1]} : vector<8x256xf32> to vector<8x128xf32>
    %c32 = arith.constant 32 : index
    %c0_69 = arith.constant 0 : index
    %255 = vector.load %arg5[%c32, %c0_69] : memref<64x128xf32, #tpu.memory_space<vmem>>, vector<8x128xf32>
    %256 = arith.addf %254, %255 : vector<8x128xf32>
    %257 = vector.extract_strided_slice %253 {offsets = [0, 128], sizes = [8, 128], strides = [1, 1]} : vector<8x256xf32> to vector<8x128xf32>
    %258 = tpu.concatenate %256, %257 in 1 : vector<8x128xf32>, vector<8x128xf32> -> vector<8x256xf32>
    %259 = arith.negf %258 : vector<8x256xf32>
    %260 = math.exp %259 : vector<8x256xf32>
    %cst_70 = arith.constant 1.000000e+00 : f32
    %261 = vector.broadcast %cst_70 : f32 to vector<8x256xf32>
    %262 = arith.addf %261, %260 : vector<8x256xf32>
    %263 = arith.divf %261, %262 : vector<8x256xf32>
    %264 = vector.extract_strided_slice %263 {offsets = [0, 0], sizes = [8, 128], strides = [1, 1]} : vector<8x256xf32> to vector<8x128xf32>
    %265 = vector.extract_strided_slice %264 {offsets = [0, 0], sizes = [8, 32], strides = [1, 1]} : vector<8x128xf32> to vector<8x32xf32>
    %266 = vector.extract_strided_slice %264 {offsets = [0, 32], sizes = [8, 32], strides = [1, 1]} : vector<8x128xf32> to vector<8x32xf32>
    %267 = vector.extract_strided_slice %264 {offsets = [0, 64], sizes = [8, 32], strides = [1, 1]} : vector<8x128xf32> to vector<8x32xf32>
    %268 = vector.extract_strided_slice %264 {offsets = [0, 96], sizes = [8, 32], strides = [1, 1]} : vector<8x128xf32> to vector<8x32xf32>
    %cst_71 = arith.constant 2.000000e+00 : f32
    %269 = vector.broadcast %cst_71 : f32 to vector<8x32xf32>
    %270 = arith.mulf %269, %268 : vector<8x32xf32>
    %cst_72 = arith.constant 1.000000e+00 : f32
    %271 = vector.broadcast %cst_72 : f32 to vector<8x32xf32>
    %272 = arith.subf %270, %271 : vector<8x32xf32>
    %273 = arith.mulf %266, %211 : vector<8x32xf32>
    %274 = arith.mulf %265, %272 : vector<8x32xf32>
    %275 = arith.addf %273, %274 : vector<8x32xf32>
    %cst_73 = arith.constant 2.000000e+00 : f32
    %276 = vector.broadcast %cst_73 : f32 to vector<8x32xf32>
    %277 = arith.mulf %276, %275 : vector<8x32xf32>
    %278 = arith.negf %277 : vector<8x32xf32>
    %279 = math.exp %278 : vector<8x32xf32>
    %cst_74 = arith.constant 1.000000e+00 : f32
    %280 = vector.broadcast %cst_74 : f32 to vector<8x32xf32>
    %281 = arith.addf %280, %279 : vector<8x32xf32>
    %282 = arith.divf %280, %281 : vector<8x32xf32>
    %cst_75 = arith.constant 2.000000e+00 : f32
    %283 = vector.broadcast %cst_75 : f32 to vector<8x32xf32>
    %284 = arith.mulf %283, %282 : vector<8x32xf32>
    %cst_76 = arith.constant 1.000000e+00 : f32
    %285 = vector.broadcast %cst_76 : f32 to vector<8x32xf32>
    %286 = arith.subf %284, %285 : vector<8x32xf32>
    %287 = arith.mulf %267, %286 : vector<8x32xf32>
    %288 = vector.extract_strided_slice %263 {offsets = [0, 128], sizes = [8, 128], strides = [1, 1]} : vector<8x256xf32> to vector<8x128xf32>
    %289 = vector.extract_strided_slice %288 {offsets = [0, 0], sizes = [8, 32], strides = [1, 1]} : vector<8x128xf32> to vector<8x32xf32>
    %290 = vector.extract_strided_slice %288 {offsets = [0, 32], sizes = [8, 32], strides = [1, 1]} : vector<8x128xf32> to vector<8x32xf32>
    %291 = vector.extract_strided_slice %288 {offsets = [0, 64], sizes = [8, 32], strides = [1, 1]} : vector<8x128xf32> to vector<8x32xf32>
    %292 = vector.extract_strided_slice %288 {offsets = [0, 96], sizes = [8, 32], strides = [1, 1]} : vector<8x128xf32> to vector<8x32xf32>
    %cst_77 = arith.constant 2.000000e+00 : f32
    %293 = vector.broadcast %cst_77 : f32 to vector<8x32xf32>
    %294 = arith.mulf %293, %292 : vector<8x32xf32>
    %cst_78 = arith.constant 1.000000e+00 : f32
    %295 = vector.broadcast %cst_78 : f32 to vector<8x32xf32>
    %296 = arith.subf %294, %295 : vector<8x32xf32>
    %297 = arith.mulf %290, %235 : vector<8x32xf32>
    %298 = arith.mulf %289, %296 : vector<8x32xf32>
    %299 = arith.addf %297, %298 : vector<8x32xf32>
    %cst_79 = arith.constant 2.000000e+00 : f32
    %300 = vector.broadcast %cst_79 : f32 to vector<8x32xf32>
    %301 = arith.mulf %300, %299 : vector<8x32xf32>
    %302 = arith.negf %301 : vector<8x32xf32>
    %303 = math.exp %302 : vector<8x32xf32>
    %cst_80 = arith.constant 1.000000e+00 : f32
    %304 = vector.broadcast %cst_80 : f32 to vector<8x32xf32>
    %305 = arith.addf %304, %303 : vector<8x32xf32>
    %306 = arith.divf %304, %305 : vector<8x32xf32>
    %cst_81 = arith.constant 2.000000e+00 : f32
    %307 = vector.broadcast %cst_81 : f32 to vector<8x32xf32>
    %308 = arith.mulf %307, %306 : vector<8x32xf32>
    %cst_82 = arith.constant 1.000000e+00 : f32
    %309 = vector.broadcast %cst_82 : f32 to vector<8x32xf32>
    %310 = arith.subf %308, %309 : vector<8x32xf32>
    %311 = arith.mulf %291, %310 : vector<8x32xf32>
    %312 = arith.truncf %287 : vector<8x32xf32> to vector<8x32xbf16>
    %313 = arith.truncf %311 : vector<8x32xf32> to vector<8x32xbf16>
    %314 = tpu.concatenate %312, %313 in 1 : vector<8x32xbf16>, vector<8x32xbf16> -> vector<8x64xbf16>
    %cst_83 = arith.constant dense<0.000000e+00> : vector<8x256xf32>
    %315 = tpu.matmul %314, %10, %cst_83 {dimension_numbers = #tpu.dot_dimension_numbers<[1], [0], [0], [1], [0, 0, 1, 1], [], []>} : vector<8x64xbf16>, vector<64x256xbf16>, vector<8x256xf32> -> vector<8x256xf32>
    %316 = vector.broadcast %11 : vector<1x256xf32> to vector<8x256xf32>
    %317 = arith.addf %315, %316 : vector<8x256xf32>
    %318 = vector.extract_strided_slice %317 {offsets = [0, 0], sizes = [8, 128], strides = [1, 1]} : vector<8x256xf32> to vector<8x128xf32>
    %c40 = arith.constant 40 : index
    %c0_84 = arith.constant 0 : index
    %319 = vector.load %arg5[%c40, %c0_84] : memref<64x128xf32, #tpu.memory_space<vmem>>, vector<8x128xf32>
    %320 = arith.addf %318, %319 : vector<8x128xf32>
    %321 = vector.extract_strided_slice %317 {offsets = [0, 128], sizes = [8, 128], strides = [1, 1]} : vector<8x256xf32> to vector<8x128xf32>
    %322 = tpu.concatenate %320, %321 in 1 : vector<8x128xf32>, vector<8x128xf32> -> vector<8x256xf32>
    %323 = arith.negf %322 : vector<8x256xf32>
    %324 = math.exp %323 : vector<8x256xf32>
    %cst_85 = arith.constant 1.000000e+00 : f32
    %325 = vector.broadcast %cst_85 : f32 to vector<8x256xf32>
    %326 = arith.addf %325, %324 : vector<8x256xf32>
    %327 = arith.divf %325, %326 : vector<8x256xf32>
    %328 = vector.extract_strided_slice %327 {offsets = [0, 0], sizes = [8, 128], strides = [1, 1]} : vector<8x256xf32> to vector<8x128xf32>
    %329 = vector.extract_strided_slice %328 {offsets = [0, 0], sizes = [8, 32], strides = [1, 1]} : vector<8x128xf32> to vector<8x32xf32>
    %330 = vector.extract_strided_slice %328 {offsets = [0, 32], sizes = [8, 32], strides = [1, 1]} : vector<8x128xf32> to vector<8x32xf32>
    %331 = vector.extract_strided_slice %328 {offsets = [0, 64], sizes = [8, 32], strides = [1, 1]} : vector<8x128xf32> to vector<8x32xf32>
    %332 = vector.extract_strided_slice %328 {offsets = [0, 96], sizes = [8, 32], strides = [1, 1]} : vector<8x128xf32> to vector<8x32xf32>
    %cst_86 = arith.constant 2.000000e+00 : f32
    %333 = vector.broadcast %cst_86 : f32 to vector<8x32xf32>
    %334 = arith.mulf %333, %332 : vector<8x32xf32>
    %cst_87 = arith.constant 1.000000e+00 : f32
    %335 = vector.broadcast %cst_87 : f32 to vector<8x32xf32>
    %336 = arith.subf %334, %335 : vector<8x32xf32>
    %337 = arith.mulf %330, %275 : vector<8x32xf32>
    %338 = arith.mulf %329, %336 : vector<8x32xf32>
    %339 = arith.addf %337, %338 : vector<8x32xf32>
    %cst_88 = arith.constant 2.000000e+00 : f32
    %340 = vector.broadcast %cst_88 : f32 to vector<8x32xf32>
    %341 = arith.mulf %340, %339 : vector<8x32xf32>
    %342 = arith.negf %341 : vector<8x32xf32>
    %343 = math.exp %342 : vector<8x32xf32>
    %cst_89 = arith.constant 1.000000e+00 : f32
    %344 = vector.broadcast %cst_89 : f32 to vector<8x32xf32>
    %345 = arith.addf %344, %343 : vector<8x32xf32>
    %346 = arith.divf %344, %345 : vector<8x32xf32>
    %cst_90 = arith.constant 2.000000e+00 : f32
    %347 = vector.broadcast %cst_90 : f32 to vector<8x32xf32>
    %348 = arith.mulf %347, %346 : vector<8x32xf32>
    %cst_91 = arith.constant 1.000000e+00 : f32
    %349 = vector.broadcast %cst_91 : f32 to vector<8x32xf32>
    %350 = arith.subf %348, %349 : vector<8x32xf32>
    %351 = arith.mulf %331, %350 : vector<8x32xf32>
    %352 = vector.extract_strided_slice %327 {offsets = [0, 128], sizes = [8, 128], strides = [1, 1]} : vector<8x256xf32> to vector<8x128xf32>
    %353 = vector.extract_strided_slice %352 {offsets = [0, 0], sizes = [8, 32], strides = [1, 1]} : vector<8x128xf32> to vector<8x32xf32>
    %354 = vector.extract_strided_slice %352 {offsets = [0, 32], sizes = [8, 32], strides = [1, 1]} : vector<8x128xf32> to vector<8x32xf32>
    %355 = vector.extract_strided_slice %352 {offsets = [0, 64], sizes = [8, 32], strides = [1, 1]} : vector<8x128xf32> to vector<8x32xf32>
    %356 = vector.extract_strided_slice %352 {offsets = [0, 96], sizes = [8, 32], strides = [1, 1]} : vector<8x128xf32> to vector<8x32xf32>
    %cst_92 = arith.constant 2.000000e+00 : f32
    %357 = vector.broadcast %cst_92 : f32 to vector<8x32xf32>
    %358 = arith.mulf %357, %356 : vector<8x32xf32>
    %cst_93 = arith.constant 1.000000e+00 : f32
    %359 = vector.broadcast %cst_93 : f32 to vector<8x32xf32>
    %360 = arith.subf %358, %359 : vector<8x32xf32>
    %361 = arith.mulf %354, %299 : vector<8x32xf32>
    %362 = arith.mulf %353, %360 : vector<8x32xf32>
    %363 = arith.addf %361, %362 : vector<8x32xf32>
    %cst_94 = arith.constant 2.000000e+00 : f32
    %364 = vector.broadcast %cst_94 : f32 to vector<8x32xf32>
    %365 = arith.mulf %364, %363 : vector<8x32xf32>
    %366 = arith.negf %365 : vector<8x32xf32>
    %367 = math.exp %366 : vector<8x32xf32>
    %cst_95 = arith.constant 1.000000e+00 : f32
    %368 = vector.broadcast %cst_95 : f32 to vector<8x32xf32>
    %369 = arith.addf %368, %367 : vector<8x32xf32>
    %370 = arith.divf %368, %369 : vector<8x32xf32>
    %cst_96 = arith.constant 2.000000e+00 : f32
    %371 = vector.broadcast %cst_96 : f32 to vector<8x32xf32>
    %372 = arith.mulf %371, %370 : vector<8x32xf32>
    %cst_97 = arith.constant 1.000000e+00 : f32
    %373 = vector.broadcast %cst_97 : f32 to vector<8x32xf32>
    %374 = arith.subf %372, %373 : vector<8x32xf32>
    %375 = arith.mulf %355, %374 : vector<8x32xf32>
    %376 = arith.truncf %351 : vector<8x32xf32> to vector<8x32xbf16>
    %377 = arith.truncf %375 : vector<8x32xf32> to vector<8x32xbf16>
    %378 = tpu.concatenate %376, %377 in 1 : vector<8x32xbf16>, vector<8x32xbf16> -> vector<8x64xbf16>
    %cst_98 = arith.constant dense<0.000000e+00> : vector<8x256xf32>
    %379 = tpu.matmul %378, %10, %cst_98 {dimension_numbers = #tpu.dot_dimension_numbers<[1], [0], [0], [1], [0, 0, 1, 1], [], []>} : vector<8x64xbf16>, vector<64x256xbf16>, vector<8x256xf32> -> vector<8x256xf32>
    %380 = vector.broadcast %11 : vector<1x256xf32> to vector<8x256xf32>
    %381 = arith.addf %379, %380 : vector<8x256xf32>
    %382 = vector.extract_strided_slice %381 {offsets = [0, 0], sizes = [8, 128], strides = [1, 1]} : vector<8x256xf32> to vector<8x128xf32>
    %c48 = arith.constant 48 : index
    %c0_99 = arith.constant 0 : index
    %383 = vector.load %arg5[%c48, %c0_99] : memref<64x128xf32, #tpu.memory_space<vmem>>, vector<8x128xf32>
    %384 = arith.addf %382, %383 : vector<8x128xf32>
    %385 = vector.extract_strided_slice %381 {offsets = [0, 128], sizes = [8, 128], strides = [1, 1]} : vector<8x256xf32> to vector<8x128xf32>
    %386 = tpu.concatenate %384, %385 in 1 : vector<8x128xf32>, vector<8x128xf32> -> vector<8x256xf32>
    %387 = arith.negf %386 : vector<8x256xf32>
    %388 = math.exp %387 : vector<8x256xf32>
    %cst_100 = arith.constant 1.000000e+00 : f32
    %389 = vector.broadcast %cst_100 : f32 to vector<8x256xf32>
    %390 = arith.addf %389, %388 : vector<8x256xf32>
    %391 = arith.divf %389, %390 : vector<8x256xf32>
    %392 = vector.extract_strided_slice %391 {offsets = [0, 0], sizes = [8, 128], strides = [1, 1]} : vector<8x256xf32> to vector<8x128xf32>
    %393 = vector.extract_strided_slice %392 {offsets = [0, 0], sizes = [8, 32], strides = [1, 1]} : vector<8x128xf32> to vector<8x32xf32>
    %394 = vector.extract_strided_slice %392 {offsets = [0, 32], sizes = [8, 32], strides = [1, 1]} : vector<8x128xf32> to vector<8x32xf32>
    %395 = vector.extract_strided_slice %392 {offsets = [0, 64], sizes = [8, 32], strides = [1, 1]} : vector<8x128xf32> to vector<8x32xf32>
    %396 = vector.extract_strided_slice %392 {offsets = [0, 96], sizes = [8, 32], strides = [1, 1]} : vector<8x128xf32> to vector<8x32xf32>
    %cst_101 = arith.constant 2.000000e+00 : f32
    %397 = vector.broadcast %cst_101 : f32 to vector<8x32xf32>
    %398 = arith.mulf %397, %396 : vector<8x32xf32>
    %cst_102 = arith.constant 1.000000e+00 : f32
    %399 = vector.broadcast %cst_102 : f32 to vector<8x32xf32>
    %400 = arith.subf %398, %399 : vector<8x32xf32>
    %401 = arith.mulf %394, %339 : vector<8x32xf32>
    %402 = arith.mulf %393, %400 : vector<8x32xf32>
    %403 = arith.addf %401, %402 : vector<8x32xf32>
    %cst_103 = arith.constant 2.000000e+00 : f32
    %404 = vector.broadcast %cst_103 : f32 to vector<8x32xf32>
    %405 = arith.mulf %404, %403 : vector<8x32xf32>
    %406 = arith.negf %405 : vector<8x32xf32>
    %407 = math.exp %406 : vector<8x32xf32>
    %cst_104 = arith.constant 1.000000e+00 : f32
    %408 = vector.broadcast %cst_104 : f32 to vector<8x32xf32>
    %409 = arith.addf %408, %407 : vector<8x32xf32>
    %410 = arith.divf %408, %409 : vector<8x32xf32>
    %cst_105 = arith.constant 2.000000e+00 : f32
    %411 = vector.broadcast %cst_105 : f32 to vector<8x32xf32>
    %412 = arith.mulf %411, %410 : vector<8x32xf32>
    %cst_106 = arith.constant 1.000000e+00 : f32
    %413 = vector.broadcast %cst_106 : f32 to vector<8x32xf32>
    %414 = arith.subf %412, %413 : vector<8x32xf32>
    %415 = arith.mulf %395, %414 : vector<8x32xf32>
    %416 = vector.extract_strided_slice %391 {offsets = [0, 128], sizes = [8, 128], strides = [1, 1]} : vector<8x256xf32> to vector<8x128xf32>
    %417 = vector.extract_strided_slice %416 {offsets = [0, 0], sizes = [8, 32], strides = [1, 1]} : vector<8x128xf32> to vector<8x32xf32>
    %418 = vector.extract_strided_slice %416 {offsets = [0, 32], sizes = [8, 32], strides = [1, 1]} : vector<8x128xf32> to vector<8x32xf32>
    %419 = vector.extract_strided_slice %416 {offsets = [0, 64], sizes = [8, 32], strides = [1, 1]} : vector<8x128xf32> to vector<8x32xf32>
    %420 = vector.extract_strided_slice %416 {offsets = [0, 96], sizes = [8, 32], strides = [1, 1]} : vector<8x128xf32> to vector<8x32xf32>
    %cst_107 = arith.constant 2.000000e+00 : f32
    %421 = vector.broadcast %cst_107 : f32 to vector<8x32xf32>
    %422 = arith.mulf %421, %420 : vector<8x32xf32>
    %cst_108 = arith.constant 1.000000e+00 : f32
    %423 = vector.broadcast %cst_108 : f32 to vector<8x32xf32>
    %424 = arith.subf %422, %423 : vector<8x32xf32>
    %425 = arith.mulf %418, %363 : vector<8x32xf32>
    %426 = arith.mulf %417, %424 : vector<8x32xf32>
    %427 = arith.addf %425, %426 : vector<8x32xf32>
    %cst_109 = arith.constant 2.000000e+00 : f32
    %428 = vector.broadcast %cst_109 : f32 to vector<8x32xf32>
    %429 = arith.mulf %428, %427 : vector<8x32xf32>
    %430 = arith.negf %429 : vector<8x32xf32>
    %431 = math.exp %430 : vector<8x32xf32>
    %cst_110 = arith.constant 1.000000e+00 : f32
    %432 = vector.broadcast %cst_110 : f32 to vector<8x32xf32>
    %433 = arith.addf %432, %431 : vector<8x32xf32>
    %434 = arith.divf %432, %433 : vector<8x32xf32>
    %cst_111 = arith.constant 2.000000e+00 : f32
    %435 = vector.broadcast %cst_111 : f32 to vector<8x32xf32>
    %436 = arith.mulf %435, %434 : vector<8x32xf32>
    %cst_112 = arith.constant 1.000000e+00 : f32
    %437 = vector.broadcast %cst_112 : f32 to vector<8x32xf32>
    %438 = arith.subf %436, %437 : vector<8x32xf32>
    %439 = arith.mulf %419, %438 : vector<8x32xf32>
    %440 = arith.truncf %415 : vector<8x32xf32> to vector<8x32xbf16>
    %441 = arith.truncf %439 : vector<8x32xf32> to vector<8x32xbf16>
    %442 = tpu.concatenate %440, %441 in 1 : vector<8x32xbf16>, vector<8x32xbf16> -> vector<8x64xbf16>
    %cst_113 = arith.constant dense<0.000000e+00> : vector<8x256xf32>
    %443 = tpu.matmul %442, %10, %cst_113 {dimension_numbers = #tpu.dot_dimension_numbers<[1], [0], [0], [1], [0, 0, 1, 1], [], []>} : vector<8x64xbf16>, vector<64x256xbf16>, vector<8x256xf32> -> vector<8x256xf32>
    %444 = vector.broadcast %11 : vector<1x256xf32> to vector<8x256xf32>
    %445 = arith.addf %443, %444 : vector<8x256xf32>
    %446 = vector.extract_strided_slice %445 {offsets = [0, 0], sizes = [8, 128], strides = [1, 1]} : vector<8x256xf32> to vector<8x128xf32>
    %c56 = arith.constant 56 : index
    %c0_114 = arith.constant 0 : index
    %447 = vector.load %arg5[%c56, %c0_114] : memref<64x128xf32, #tpu.memory_space<vmem>>, vector<8x128xf32>
    %448 = arith.addf %446, %447 : vector<8x128xf32>
    %449 = vector.extract_strided_slice %445 {offsets = [0, 128], sizes = [8, 128], strides = [1, 1]} : vector<8x256xf32> to vector<8x128xf32>
    %450 = tpu.concatenate %448, %449 in 1 : vector<8x128xf32>, vector<8x128xf32> -> vector<8x256xf32>
    %451 = arith.negf %450 : vector<8x256xf32>
    %452 = math.exp %451 : vector<8x256xf32>
    %cst_115 = arith.constant 1.000000e+00 : f32
    %453 = vector.broadcast %cst_115 : f32 to vector<8x256xf32>
    %454 = arith.addf %453, %452 : vector<8x256xf32>
    %455 = arith.divf %453, %454 : vector<8x256xf32>
    %456 = vector.extract_strided_slice %455 {offsets = [0, 0], sizes = [8, 128], strides = [1, 1]} : vector<8x256xf32> to vector<8x128xf32>
    %457 = vector.extract_strided_slice %456 {offsets = [0, 0], sizes = [8, 32], strides = [1, 1]} : vector<8x128xf32> to vector<8x32xf32>
    %458 = vector.extract_strided_slice %456 {offsets = [0, 32], sizes = [8, 32], strides = [1, 1]} : vector<8x128xf32> to vector<8x32xf32>
    %459 = vector.extract_strided_slice %456 {offsets = [0, 64], sizes = [8, 32], strides = [1, 1]} : vector<8x128xf32> to vector<8x32xf32>
    %460 = vector.extract_strided_slice %456 {offsets = [0, 96], sizes = [8, 32], strides = [1, 1]} : vector<8x128xf32> to vector<8x32xf32>
    %cst_116 = arith.constant 2.000000e+00 : f32
    %461 = vector.broadcast %cst_116 : f32 to vector<8x32xf32>
    %462 = arith.mulf %461, %460 : vector<8x32xf32>
    %cst_117 = arith.constant 1.000000e+00 : f32
    %463 = vector.broadcast %cst_117 : f32 to vector<8x32xf32>
    %464 = arith.subf %462, %463 : vector<8x32xf32>
    %465 = arith.mulf %458, %403 : vector<8x32xf32>
    %466 = arith.mulf %457, %464 : vector<8x32xf32>
    %467 = arith.addf %465, %466 : vector<8x32xf32>
    %cst_118 = arith.constant 2.000000e+00 : f32
    %468 = vector.broadcast %cst_118 : f32 to vector<8x32xf32>
    %469 = arith.mulf %468, %467 : vector<8x32xf32>
    %470 = arith.negf %469 : vector<8x32xf32>
    %471 = math.exp %470 : vector<8x32xf32>
    %cst_119 = arith.constant 1.000000e+00 : f32
    %472 = vector.broadcast %cst_119 : f32 to vector<8x32xf32>
    %473 = arith.addf %472, %471 : vector<8x32xf32>
    %474 = arith.divf %472, %473 : vector<8x32xf32>
    %cst_120 = arith.constant 2.000000e+00 : f32
    %475 = vector.broadcast %cst_120 : f32 to vector<8x32xf32>
    %476 = arith.mulf %475, %474 : vector<8x32xf32>
    %cst_121 = arith.constant 1.000000e+00 : f32
    %477 = vector.broadcast %cst_121 : f32 to vector<8x32xf32>
    %478 = arith.subf %476, %477 : vector<8x32xf32>
    %479 = arith.mulf %459, %478 : vector<8x32xf32>
    %480 = vector.extract_strided_slice %455 {offsets = [0, 128], sizes = [8, 128], strides = [1, 1]} : vector<8x256xf32> to vector<8x128xf32>
    %481 = vector.extract_strided_slice %480 {offsets = [0, 0], sizes = [8, 32], strides = [1, 1]} : vector<8x128xf32> to vector<8x32xf32>
    %482 = vector.extract_strided_slice %480 {offsets = [0, 32], sizes = [8, 32], strides = [1, 1]} : vector<8x128xf32> to vector<8x32xf32>
    %483 = vector.extract_strided_slice %480 {offsets = [0, 64], sizes = [8, 32], strides = [1, 1]} : vector<8x128xf32> to vector<8x32xf32>
    %484 = vector.extract_strided_slice %480 {offsets = [0, 96], sizes = [8, 32], strides = [1, 1]} : vector<8x128xf32> to vector<8x32xf32>
    %cst_122 = arith.constant 2.000000e+00 : f32
    %485 = vector.broadcast %cst_122 : f32 to vector<8x32xf32>
    %486 = arith.mulf %485, %484 : vector<8x32xf32>
    %cst_123 = arith.constant 1.000000e+00 : f32
    %487 = vector.broadcast %cst_123 : f32 to vector<8x32xf32>
    %488 = arith.subf %486, %487 : vector<8x32xf32>
    %489 = arith.mulf %482, %427 : vector<8x32xf32>
    %490 = arith.mulf %481, %488 : vector<8x32xf32>
    %491 = arith.addf %489, %490 : vector<8x32xf32>
    %cst_124 = arith.constant 2.000000e+00 : f32
    %492 = vector.broadcast %cst_124 : f32 to vector<8x32xf32>
    %493 = arith.mulf %492, %491 : vector<8x32xf32>
    %494 = arith.negf %493 : vector<8x32xf32>
    %495 = math.exp %494 : vector<8x32xf32>
    %cst_125 = arith.constant 1.000000e+00 : f32
    %496 = vector.broadcast %cst_125 : f32 to vector<8x32xf32>
    %497 = arith.addf %496, %495 : vector<8x32xf32>
    %498 = arith.divf %496, %497 : vector<8x32xf32>
    %cst_126 = arith.constant 2.000000e+00 : f32
    %499 = vector.broadcast %cst_126 : f32 to vector<8x32xf32>
    %500 = arith.mulf %499, %498 : vector<8x32xf32>
    %cst_127 = arith.constant 1.000000e+00 : f32
    %501 = vector.broadcast %cst_127 : f32 to vector<8x32xf32>
    %502 = arith.subf %500, %501 : vector<8x32xf32>
    %503 = arith.mulf %483, %502 : vector<8x32xf32>
    %504 = arith.truncf %479 : vector<8x32xf32> to vector<8x32xbf16>
    %505 = arith.truncf %503 : vector<8x32xf32> to vector<8x32xbf16>
    %506 = tpu.concatenate %504, %505 in 1 : vector<8x32xbf16>, vector<8x32xbf16> -> vector<8x64xbf16>
    %cst_128 = arith.constant dense<0.000000e+00> : vector<8x256xf32>
    %507 = tpu.matmul %506, %10, %cst_128 {dimension_numbers = #tpu.dot_dimension_numbers<[1], [0], [0], [1], [0, 0, 1, 1], [], []>} : vector<8x64xbf16>, vector<64x256xbf16>, vector<8x256xf32> -> vector<8x256xf32>
    %508 = vector.broadcast %11 : vector<1x256xf32> to vector<8x256xf32>
    %509 = arith.addf %507, %508 : vector<8x256xf32>
    %510 = arith.negf %509 : vector<8x256xf32>
    %511 = math.exp %510 : vector<8x256xf32>
    %cst_129 = arith.constant 1.000000e+00 : f32
    %512 = vector.broadcast %cst_129 : f32 to vector<8x256xf32>
    %513 = arith.addf %512, %511 : vector<8x256xf32>
    %514 = arith.divf %512, %513 : vector<8x256xf32>
    %515 = vector.extract_strided_slice %514 {offsets = [0, 128], sizes = [8, 128], strides = [1, 1]} : vector<8x256xf32> to vector<8x128xf32>
    %516 = vector.extract_strided_slice %515 {offsets = [0, 0], sizes = [8, 32], strides = [1, 1]} : vector<8x128xf32> to vector<8x32xf32>
    %517 = vector.extract_strided_slice %515 {offsets = [0, 32], sizes = [8, 32], strides = [1, 1]} : vector<8x128xf32> to vector<8x32xf32>
    %518 = vector.extract_strided_slice %515 {offsets = [0, 64], sizes = [8, 32], strides = [1, 1]} : vector<8x128xf32> to vector<8x32xf32>
    %519 = vector.extract_strided_slice %515 {offsets = [0, 96], sizes = [8, 32], strides = [1, 1]} : vector<8x128xf32> to vector<8x32xf32>
    %cst_130 = arith.constant 2.000000e+00 : f32
    %520 = vector.broadcast %cst_130 : f32 to vector<8x32xf32>
    %521 = arith.mulf %520, %519 : vector<8x32xf32>
    %cst_131 = arith.constant 1.000000e+00 : f32
    %522 = vector.broadcast %cst_131 : f32 to vector<8x32xf32>
    %523 = arith.subf %521, %522 : vector<8x32xf32>
    %524 = arith.mulf %517, %491 : vector<8x32xf32>
    %525 = arith.mulf %516, %523 : vector<8x32xf32>
    %526 = arith.addf %524, %525 : vector<8x32xf32>
    %cst_132 = arith.constant 2.000000e+00 : f32
    %527 = vector.broadcast %cst_132 : f32 to vector<8x32xf32>
    %528 = arith.mulf %527, %526 : vector<8x32xf32>
    %529 = arith.negf %528 : vector<8x32xf32>
    %530 = math.exp %529 : vector<8x32xf32>
    %cst_133 = arith.constant 1.000000e+00 : f32
    %531 = vector.broadcast %cst_133 : f32 to vector<8x32xf32>
    %532 = arith.addf %531, %530 : vector<8x32xf32>
    %533 = arith.divf %531, %532 : vector<8x32xf32>
    %cst_134 = arith.constant 2.000000e+00 : f32
    %534 = vector.broadcast %cst_134 : f32 to vector<8x32xf32>
    %535 = arith.mulf %534, %533 : vector<8x32xf32>
    %cst_135 = arith.constant 1.000000e+00 : f32
    %536 = vector.broadcast %cst_135 : f32 to vector<8x32xf32>
    %537 = arith.subf %535, %536 : vector<8x32xf32>
    %538 = arith.mulf %518, %537 : vector<8x32xf32>
    %539 = tpu.concatenate %479, %467 in 1 : vector<8x32xf32>, vector<8x32xf32> -> vector<8x64xf32>
    %c0_136 = arith.constant 0 : index
    %c0_137 = arith.constant 0 : index
    %c0_138 = arith.constant 0 : index
    %540 = vector.load %arg4[%c0_136, %c0_137, %c0_138] : memref<2x8x64xf32, #tpu.memory_space<vmem>>, vector<1x8x64xf32>
    %541 = vector.shape_cast %540 : vector<1x8x64xf32> to vector<8x64xf32>
    %542 = vector.shape_cast %539 : vector<8x64xf32> to vector<1x8x64xf32>
    tpu.vector_store %arg4[%c0_136, %c0_137, %c0_138], %542 {strides = array<i32>} : memref<2x8x64xf32, #tpu.memory_space<vmem>>, vector<1x8x64xf32>,
    %543 = tpu.concatenate %538, %526 in 1 : vector<8x32xf32>, vector<8x32xf32> -> vector<8x64xf32>
    %c1 = arith.constant 1 : index
    %c0_139 = arith.constant 0 : index
    %c0_140 = arith.constant 0 : index
    %544 = vector.load %arg4[%c1, %c0_139, %c0_140] : memref<2x8x64xf32, #tpu.memory_space<vmem>>, vector<1x8x64xf32>
    %545 = vector.shape_cast %544 : vector<1x8x64xf32> to vector<8x64xf32>
    %546 = vector.shape_cast %543 : vector<8x64xf32> to vector<1x8x64xf32>
    tpu.vector_store %arg4[%c1, %c0_139, %c0_140], %546 {strides = array<i32>} : memref<2x8x64xf32, #tpu.memory_space<vmem>>, vector<1x8x64xf32>,
    return
  }
}

</mosaic_0001>

<bundles_post_ra>
// kernel: encoder_forward.1
= control target key start
LH: loop header
LB: loop body
LE: loop exit
PB: predicated region body
PF: predicated region fallthrough
CT: control target
= control target key end

     0   :  { %v1570_v0 = vmov 0   ;;  %vm121_vm0 = vcmask 1043456   ;;  %v26_v18 = vlaneseq  ;;  %vm108_vm5 = vcmask 457728   ;;  %s1572_s22 = smov 32   ;;  %s1573_s30 = smov 64   ;;  %s1988_s0 = inlined_call_operand.vmem [shape: s32[64,1], index: 0, kind: input, shape index: {}]   ;;  %s1989_s2 = inlined_call_operand.vmem [shape: bf16[64,256], index: 2, kind: input, shape index: {}]   ;;  %s1990_s1 = inlined_call_operand.vmem [shape: bf16[56,128], index: 1, kind: input, shape index: {}]   ;;  %s1991_s3 = inlined_call_operand.vmem [shape: f32[1,256], index: 3, kind: input, shape index: {}]   ;;  %s1992_s4 = inlined_call_operand.vmem [shape: f32[2,8,64], index: 4, kind: output, shape index: {}]  }
   0x1   :  { %1418 = vset.pattern.permute.xlu1 %v1570_v0  ;;  %1417 = vset.pattern.permute.xlu0 %v1570_v0  ;;  %v20_v1 = vld [vmem:[%s1988_s0 + $0x10] sm:$0xff]  ;;  %v18_v2 = vld [vmem:[%s1988_s0] sm:$0xff]  ;;  %v21_v3 = vld [vmem:[%s1988_s0 + $0x18] sm:$0xff]  ;;  %v1571_v24 = vmov 0.0   ;;  %vm207_vm10 = vcmask 261120   ;;  %vm260_vm11 = vcmask 523264  }
   0x2   :  { %35 = vperm.xlu1 %1418, %v20_v1   ;;  %29 = vperm.xlu0 %1417, %v18_v2   ;;  %v19_v4 = vld [vmem:[%s1988_s0 + $0x8] sm:$0xff]  ;;  %v1617_v5 = vld [vmem:[%s1989_s2 + $0x34] ss:$8 sps:$4 sm:$0xff]   ;;  %v1622_v6 = vld [vmem:[%s1989_s2 + $0x30] ss:$8 sps:$4 sm:$0xff]   ;;  %v1687_v19 = vand.u32 127, %v26_v18 }
   0x3   :  { %295 = vmatprep.mubr.bf16.mxu1 %v1570_v0  ;;  %v1628_v7 = vld [vmem:[%s1989_s2 + $0x24] ss:$8 sps:$4 sm:$0xff]   ;;  %271 = vmatprep.subr.bf16.mxu1 %v1617_v5  ;;  %v1425_v8 = vld [vmem:[%s1990_s1 + $0x18] ss:$0 sps:$4 sm:$0xff]   ;;  %v1637_v9 = vld [vmem:[%s1989_s2 + $0x20] ss:$8 sps:$4 sm:$0xff]  }
   0x4   :  { %272 = vmatpush1.bf16.msra.mxu1 %v1622_v6  ;;  %1411 = vmatprep.subr.msk.bf16.mxu0 %vm121_vm0, %v1425_v8  ;;  %v123_v10 = vsel %vm121_vm0, %v1425_v8, 0  ;;  %v1429_v11 = vld [vmem:[%s1990_s1 + $0x10] sm:$0xff]   ;;  %v1433_v13 = vld [vmem:[%s1990_s1 + $0x8] sm:$0xff]   ;;  %v1434_v16 = vld [vmem:[%s1990_s1] sm:$0xff]   ;;  %v1707_v35 = vshrl.u32 %v26_v18, 7 }
   0x5   :  { %273 = vmatprep.subr.bf16.mxu1 %v1628_v7  ;;  %1396 = vmatpush3.bf16.msra.mxu0 %v123_v10  ;;  %v1647_v12 = vld [vmem:[%s1989_s2 + $0x14] ss:$8 sps:$4 sm:$0xff]   ;;  %v1656_v14 = vld [vmem:[%s1989_s2 + $0x10] ss:$8 sps:$4 sm:$0xff]   ;;  %v1662_v15 = vld [vmem:[%s1989_s2 + $0x4] ss:$8 sps:$4 sm:$0xff]  }
   0x6   :  { %38 = vperm.xlu1 %1418, %v21_v3   ;;  %32 = vperm.xlu0 %1417, %v19_v4   ;;  %v1671_v17 = vld [vmem:[%s1989_s2] ss:$8 sps:$4 sm:$0xff]   ;;  %v212_v36 = vsub.s32 0, %v1707_v35  ;;  %v24_v52 = vld [vmem:[%s1988_s0 + $0x30] sm:$0xff]  ;;  %v25_v1 = vld [vmem:[%s1988_s0 + $0x38] sm:$0xff] }
   0x7   :  { %1397 = vmatprep.subr.bf16.mxu0 %v1429_v11  ;;  %v1713_v37 = vld [vmem:[%s1991_s3] sm:$0x3]  ;;  %v23_v63 = vld [vmem:[%s1988_s0 + $0x28] sm:$0xff] }
   0x8   :  { %274 = vmatpush1.bf16.msra.mxu1 %v1637_v9  ;;  %v1716_v38 = vrot.slane %v1713_v37, %v212_v36  ;;  %v22_v51 = vld [vmem:[%s1988_s0 + $0x20] sm:$0xff]  ;;  %s1574_s0 = smov 96  }
   0x9   :  { %275 = vmatprep.subr.bf16.mxu1 %v1647_v12  ;;  %1398 = vmatpush3.bf16.msra.mxu0 %v1429_v11 }
   0xa   :  { %1399 = vmatprep.subr.bf16.mxu0 %v1433_v13 }
   0xc   :  { %276 = vmatpush1.bf16.msra.mxu1 %v1656_v14 }
   0xd   :  { %277 = vmatprep.subr.bf16.mxu1 %v1662_v15  ;;  %1400 = vmatpush3.bf16.msra.mxu0 %v1433_v13 }
   0xe   :  { %1401 = vmatprep.subr.bf16.mxu0 %v1434_v16 }
  0x10   :  { %278 = vmatpush1.bf16.msra.mxu1 %v1671_v17 }
  0x11   :  { %1402 = vmatpush3.bf16.msra.mxu0 %v1434_v16  ;;  %476 = vmatprep.subr.bf16.mxu1 %v1617_v5 }
  0x12   :  { %354 = vmatprep.subr.bf16.mxu0 %v1617_v5 }
  0x13   :  { %296 = vmatmul.mubr.bf16.vlgmr.msra.gmra.mxu1 %v1570_v0 }
  0x14   :  { %477 = vmatpush1.bf16.msra.mxu1 %v1622_v6  ;;  %500 = vmatprep.mubr.bf16.mxu1 %v1570_v0 }
  0x15   :  { %478 = vmatprep.subr.bf16.mxu1 %v1628_v7 }
  0x18   :  { %479 = vmatpush1.bf16.msra.mxu1 %v1637_v9 }
  0x19   :  { %480 = vmatprep.subr.bf16.mxu1 %v1647_v12 }
  0x1c   :  { %481 = vmatpush1.bf16.msra.mxu1 %v1656_v14 }
  0x1d   :  { %482 = vmatprep.subr.bf16.mxu1 %v1662_v15 }
  0x20   :  { %483 = vmatpush1.bf16.msra.mxu1 %v1671_v17 }
  0x21   :  { %720 = vmatprep.subr.bf16.mxu1 %v1617_v5 }
  0x7d   :  { %v36_v20 = vpop.permute.xlu1 %35  ;;  %v30_v21 = vpop.permute.xlu0 %29 }
  0x7e   :  { %vm54_vm1 = vcmp.eq.s32.totalorder %v36_v20, %v1687_v19  ;;  %vm52_vm2 = vcmp.eq.s32.totalorder %v30_v21, %v1687_v19 }
  0x7f   :  { %v1292_v25 = vsel %vm54_vm1, 1.0, %v1571_v24  ;;  %v1290_v26 = vsel %vm52_vm2, 1.0, %v1571_v24 }
  0x81   :  { %v39_v22 = vpop.permute.xlu1 %38  ;;  %v33_v23 = vpop.permute.xlu0 %32 }
  0x82   :  { %vm55_vm3 = vcmp.eq.s32.totalorder %v39_v22, %v1687_v19  ;;  %vm53_vm4 = vcmp.eq.s32.totalorder %v33_v23, %v1687_v19 }
  0x83   :  { %v1293_v27 = vsel %vm55_vm3, 1.0, %v1571_v24  ;;  %v1291_v28 = vsel %vm53_vm4, 1.0, %v1571_v24 }
  0x84   :  { %v77_v29 = vpack.c.bf16 %v1293_v27, %v1292_v25  ;;  %v76_v30 = vpack.c.bf16 %v1291_v28, %v1290_v26 }
  0x86   :  { %1403 = vmatprep.mubr.msk.bf16.mxu0 %vm108_vm5, %v76_v30  ;;  %v216_v30 = vsub.s32 1, %v1707_v35 }
  0x87   :  { %1404 = vmatmul.mubr.msk.bf16.vlgmr.msra.gmra.mxu0 %vm108_vm5, %v77_v29 }
  0x88   :  { %355 = vmatpush1.bf16.msra.mxu0 %v1622_v6 }
  0x89   :  { %356 = vmatprep.subr.bf16.mxu0 %v1628_v7 }
  0x8c   :  { %357 = vmatpush1.bf16.msra.mxu0 %v1637_v9 }
  0x8d   :  { %358 = vmatprep.subr.bf16.mxu0 %v1647_v12 }
  0x90   :  { %359 = vmatpush1.bf16.msra.mxu0 %v1656_v14 }
  0x91   :  { %360 = vmatprep.subr.bf16.mxu0 %v1662_v15 }
  0x94   :  { %361 = vmatpush1.bf16.msra.mxu0 %v1671_v17 }
  0x95   :  { %598 = vmatprep.subr.bf16.mxu0 %v1617_v5 }
  0xd3   :  { %v297_v31 = vpop.f32.mrf.mxu1 }
  0xd4   :  { %v298_v39 = vadd.f32 %v297_v31, %v1716_v38 }
  0xd5   :  { %v299_v32 = vpop.f32.mrf.mxu1 }
  0xd6   :  { %v1774_v32 = vrot.slane %v1713_v37, %v216_v30 }
  0xd7   :  { %v300_v33 = vpop.f32.mrf.mxu1 }
  0xd9   :  { %v301_v34 = vpop.f32.mrf.mxu1 }
 0x147   :  { %v1719_v40 = vpop.f32.mrf.mxu0 }
 0x149   :  { %v159_v41 = vpop.f32.mrf.mxu0 }
 0x14a   :  { %v304_v42 = vadd.f32 %v298_v39, %v159_v41 }
 0x14c   :  { %v1314_v43 = vmul.f32 -1.442695, %v304_v42 }
 0x14e   :  { %1435 = vpow2.f32 %v1314_v43 }
 0x15b   :  { %v1436_v44 = vpop.eup %1435 }
 0x15c   :  { %v308_v45 = vadd.f32 1.0, %v1436_v44 }
 0x15e   :  { %1437 = vrcp.f32 %v308_v45 }
 0x16b   :  { %v1438_v46 = vpop.eup %1437 }
 0x16c   :  { %v311_v47 = vmul.f32 2.0, %v1438_v46  ;;  %v313_v53 = vmul.f32 0.0, %v1438_v46 }
 0x16e   :  { %v1315_v48 = vadd.f32 -1.0, %v311_v47 }
 0x170   :  { %315 = vrot.lane.b32.xlu0 %v1315_v48, %s1572_s22 }
 0x1e2   :  { %v316_v49 = vpop.permute.xlu0 %315 }
 0x1e3   :  { %v318_v50 = vmul.f32 %v1438_v46, %v316_v49 }
 0x1e5   :  { %320 = vrot.lane.b32.xlu1 %v318_v50, %s1572_s22 }
 0x1e9   :  { %41 = vperm.xlu1 %1418, %v22_v51  }
 0x1ed   :  { %47 = vperm.xlu1 %1418, %v24_v52  }
 0x257   :  { %v321_v54 = vpop.permute.xlu1 %320 }
 0x258   :  { %v1729_v55 = vadd.f32 %v321_v54, %v313_v53 }
 0x25a   :  { %v1316_v56 = vmul.f32 -2.0, %v1729_v55 }
 0x25c   :  { %v326_v57 = vmul.f32 1.442695, %v1316_v56 }
 0x25e   :  { %1439 = vpow2.f32 %v326_v57 }
 0x264   :  { %v42_v8 = vpop.permute.xlu1 %41 }
 0x265   :  { %vm56_vm6 = vcmp.eq.s32.totalorder %v42_v8, %v1687_v19 }
 0x266   :  { %v1294_v13 = vsel %vm56_vm6, 1.0, %v1571_v24 }
 0x268   :  { %v48_v10 = vpop.permute.xlu1 %47 }
 0x269   :  { %vm58_vm8 = vcmp.eq.s32.totalorder %v48_v10, %v1687_v19 }
 0x26a   :  { %v1296_v21 = vsel %vm58_vm8, 1.0, %v1571_v24 }
 0x26b   :  { %v1440_v58 = vpop.eup %1439 }
 0x26c   :  { %v328_v59 = vadd.f32 1.0, %v1440_v58 }
 0x26e   :  { %1441 = vrcp.f32 %v328_v59 }
 0x27b   :  { %v1442_v60 = vpop.eup %1441 }
 0x27c   :  { %v331_v61 = vmul.f32 2.0, %v1442_v60 }
 0x27e   :  { %v1317_v62 = vadd.f32 -1.0, %v331_v61 }
 0x280   :  { %334 = vrot.lane.b32.xlu0 %v1317_v62, %s1572_s22 }
 0x284   :  { %44 = vperm.xlu0 %1417, %v23_v63  }
 0x288   :  { %50 = vperm.xlu0 %1417, %v25_v1  }
 0x2f2   :  { %v335_v2 = vpop.permute.xlu0 %334 }
 0x2f3   :  { %v337_v3 = vmul.f32 %v1438_v46, %v335_v2 }
 0x2f5   :  { %v338_v4 = vpack.c.bf16 %v337_v3, %v337_v3 }
 0x2f7   :  { %340 = vrot.lane.b32.xlu1 %v338_v4, %s1573_s30 }
 0x2ff   :  { %v45_v11 = vpop.permute.xlu0 %44 }
 0x300   :  { %vm57_vm7 = vcmp.eq.s32.totalorder %v45_v11, %v1687_v19 }
 0x301   :  { %v1295_v16 = vsel %vm57_vm7, 1.0, %v1571_v24 }
 0x302   :  { %v78_v18 = vpack.c.bf16 %v1295_v16, %v1294_v13 }
 0x303   :  { %v51_v20 = vpop.permute.xlu0 %50 }
 0x304   :  { %vm59_vm9 = vcmp.eq.s32.totalorder %v51_v20, %v1687_v19  ;;  %1407 = vmatprep.mubr.msk.bf16.mxu0 %vm108_vm5, %v78_v18  ;;  %v1762_v19 = vpop.f32.mrf.mxu0 }
 0x305   :  { %v1297_v22 = vsel %vm59_vm9, 1.0, %v1571_v24 }
 0x306   :  { %v79_v23 = vpack.c.bf16 %v1297_v22, %v1296_v21  ;;  %v162_v24 = vpop.f32.mrf.mxu0 }
 0x308   :  { %1408 = vmatmul.mubr.msk.bf16.gmra.mxu0 %vm108_vm5, %v79_v23 }
 0x309   :  { %378 = vmatprep.mubr.bf16.mxu0 %v1570_v0 }
 0x369   :  { %v341_v25 = vpop.permute.xlu1 %340 }
 0x36a   :  { %v343_v26 = vsel %vm207_vm10, %v341_v25, 0 }
 0x36b   :  { %1318 = vmatmul.mubr.msk.bf16.vlgmr.msra.gmra.mxu0 %vm260_vm11, %v343_v26 }
 0x36c   :  { %599 = vmatpush1.bf16.msra.mxu0 %v1622_v6  ;;  %622 = vmatprep.mubr.bf16.mxu0 %v1570_v0 }
 0x36d   :  { %600 = vmatprep.subr.bf16.mxu0 %v1628_v7 }
 0x370   :  { %601 = vmatpush1.bf16.msra.mxu0 %v1637_v9 }
 0x371   :  { %602 = vmatprep.subr.bf16.mxu0 %v1647_v12 }
 0x374   :  { %603 = vmatpush1.bf16.msra.mxu0 %v1656_v14 }
 0x375   :  { %604 = vmatprep.subr.bf16.mxu0 %v1662_v15 }
 0x378   :  { %605 = vmatpush1.bf16.msra.mxu0 %v1671_v17 }
 0x379   :  { %842 = vmatprep.subr.bf16.mxu0 %v1617_v5 }
 0x3c8   :  { %v1764_v27 = vpop.f32.mrf.mxu0 }
 0x3ca   :  { %v1766_v28 = vpop.f32.mrf.mxu0 }
 0x3cc   :  { %v1768_v29 = vpop.f32.mrf.mxu0 }
 0x3ce   :  { %v1771_v31 = vpop.f32.mrf.mxu0 }
 0x42b   :  { %v380_v33 = vpop.f32.mrf.mxu0 }
 0x42c   :  { %v381_v34 = vadd.f32 %v380_v33, %v1716_v38 }
 0x42d   :  { %v382_v36 = vpop.f32.mrf.mxu0 }
 0x42e   :  { %v388_v39 = vadd.f32 %v381_v34, %v162_v24  ;;  %v383_v41 = vadd.f32 %v382_v36, %v1774_v32 }
 0x42f   :  { %v384_v42 = vpop.f32.mrf.mxu0 }
 0x430   :  { %v1319_v43 = vmul.f32 -1.442695, %v388_v39  ;;  %v1320_v44 = vmul.f32 -1.442695, %v383_v41 }
 0x431   :  { %v385_v45 = vpop.f32.mrf.mxu0 }
 0x432   :  { %1443 = vpow2.f32 %v1319_v43 }
 0x433   :  { %1445 = vpow2.f32 %v1320_v44 }
 0x43f   :  { %v1444_v46 = vpop.eup %1443 }
 0x440   :  { %v1446_v35 = vpop.eup %1445  ;;  %v395_v47 = vadd.f32 1.0, %v1444_v46 }
 0x441   :  { %v396_v48 = vadd.f32 1.0, %v1446_v35 }
 0x442   :  { %1447 = vrcp.f32 %v395_v47 }
 0x443   :  { %1449 = vrcp.f32 %v396_v48 }
 0x44f   :  { %v1448_v37 = vpop.eup %1447 }
 0x450   :  { %v1450_v49 = vpop.eup %1449  ;;  %v401_v50 = vmul.f32 2.0, %v1448_v37  ;;  %v403_v59 = vmul.f32 %v1448_v37, %v1729_v55 }
 0x451   :  { %v428_v51 = vmul.f32 2.0, %v1450_v49  ;;  %v430_v60 = vmul.f32 0.0, %v1450_v49 }
 0x452   :  { %v1321_v52 = vadd.f32 -1.0, %v401_v50 }
 0x453   :  { %v1324_v53 = vadd.f32 -1.0, %v428_v51 }
 0x454   :  { %405 = vrot.lane.b32.xlu0 %v1321_v52, %s1572_s22 }
 0x455   :  { %432 = vrot.lane.b32.xlu1 %v1324_v53, %s1572_s22 }
 0x4c6   :  { %v406_v54 = vpop.permute.xlu0 %405 }
 0x4c7   :  { %v433_v56 = vpop.permute.xlu1 %432  ;;  %v408_v57 = vmul.f32 %v1448_v37, %v406_v54 }
 0x4c8   :  { %v435_v58 = vmul.f32 %v1450_v49, %v433_v56 }
 0x4c9   :  { %410 = vrot.lane.b32.xlu0 %v408_v57, %s1572_s22 }
 0x4ca   :  { %437 = vrot.lane.b32.xlu1 %v435_v58, %s1572_s22 }
 0x53b   :  { %v411_v61 = vpop.permute.xlu0 %410 }
 0x53c   :  { %v438_v62 = vpop.permute.xlu1 %437  ;;  %v1783_v63 = vadd.f32 %v411_v61, %v403_v59 }
 0x53d   :  { %v1785_v1 = vadd.f32 %v438_v62, %v430_v60 }
 0x53e   :  { %v1322_v2 = vmul.f32 -2.0, %v1783_v63 }
 0x53f   :  { %v1325_v3 = vmul.f32 -2.0, %v1785_v1 }
 0x540   :  { %v416_v4 = vmul.f32 1.442695, %v1322_v2 }
 0x541   :  { %v443_v8 = vmul.f32 1.442695, %v1325_v3 }
 0x542   :  { %1451 = vpow2.f32 %v416_v4 }
 0x543   :  { %1453 = vpow2.f32 %v443_v8 }
 0x54f   :  { %v1452_v10 = vpop.eup %1451 }
 0x550   :  { %v1454_v11 = vpop.eup %1453  ;;  %v418_v13 = vadd.f32 1.0, %v1452_v10 }
 0x551   :  { %v445_v16 = vadd.f32 1.0, %v1454_v11 }
 0x552   :  { %1455 = vrcp.f32 %v418_v13 }
 0x553   :  { %1457 = vrcp.f32 %v445_v16 }
 0x55f   :  { %v1456_v55 = vpop.eup %1455 }
 0x560   :  { %v1458_v18 = vpop.eup %1457  ;;  %v421_v20 = vmul.f32 2.0, %v1456_v55 }
 0x561   :  { %v448_v21 = vmul.f32 2.0, %v1458_v18 }
 0x562   :  { %v1323_v22 = vadd.f32 -1.0, %v421_v20 }
 0x563   :  { %v1326_v23 = vadd.f32 -1.0, %v448_v21 }
 0x564   :  { %424 = vrot.lane.b32.xlu0 %v1323_v22, %s1572_s22 }
 0x565   :  { %451 = vrot.lane.b32.xlu1 %v1326_v23, %s1572_s22 }
 0x5d6   :  { %v425_v25 = vpop.permute.xlu0 %424 }
 0x5d7   :  { %v452_v26 = vpop.permute.xlu1 %451  ;;  %v427_v24 = vmul.f32 %v1448_v37, %v425_v25 }
 0x5d8   :  { %v454_v30 = vmul.f32 %v1450_v49, %v452_v26 }
 0x5d9   :  { %v455_v33 = vpack.c.bf16 %v427_v24, %v427_v24 }
 0x5da   :  { %v456_v34 = vpack.c.bf16 %v454_v30, %v454_v30 }
 0x5db   :  { %458 = vrot.lane.b32.xlu0 %v455_v33, %s1573_s30 }
 0x5dc   :  { %461 = vrot.lane.b32.xlu1 %v456_v34, %s1574_s0 }
 0x64d   :  { %v459_v36 = vpop.permute.xlu0 %458 }
 0x64e   :  { %v462_v39 = vpop.permute.xlu1 %461 }
 0x64f   :  { %v465_v41 = vsel %vm207_vm10, %v459_v36, %v462_v39 }
 0x650   :  { %1327 = vmatmul.mubr.msk.bf16.vlgmr.msra.gmra.mxu1 %vm260_vm11, %v465_v41 }
 0x651   :  { %721 = vmatpush1.bf16.msra.mxu1 %v1622_v6  ;;  %744 = vmatprep.mubr.bf16.mxu1 %v1570_v0 }
 0x652   :  { %722 = vmatprep.subr.bf16.mxu1 %v1628_v7 }
 0x655   :  { %723 = vmatpush1.bf16.msra.mxu1 %v1637_v9 }
 0x656   :  { %724 = vmatprep.subr.bf16.mxu1 %v1647_v12 }
 0x659   :  { %725 = vmatpush1.bf16.msra.mxu1 %v1656_v14 }
 0x65a   :  { %726 = vmatprep.subr.bf16.mxu1 %v1662_v15 }
 0x65d   :  { %727 = vmatpush1.bf16.msra.mxu1 %v1671_v17 }
 0x65e   :  { %964 = vmatprep.subr.bf16.mxu1 %v1617_v5 }
 0x710   :  { %v502_v42 = vpop.f32.mrf.mxu1 }
 0x711   :  { %v503_v43 = vadd.f32 %v502_v42, %v1716_v38 }
 0x712   :  { %v504_v44 = vpop.f32.mrf.mxu1 }
 0x713   :  { %v510_v45 = vadd.f32 %v1719_v40, %v503_v43  ;;  %v505_v46 = vadd.f32 %v504_v44, %v1774_v32 }
 0x714   :  { %v506_v35 = vpop.f32.mrf.mxu1 }
 0x715   :  { %v1328_v47 = vmul.f32 -1.442695, %v510_v45  ;;  %v1329_v48 = vmul.f32 -1.442695, %v505_v46 }
 0x716   :  { %v507_v37 = vpop.f32.mrf.mxu1 }
 0x717   :  { %1459 = vpow2.f32 %v1328_v47 }
 0x718   :  { %1461 = vpow2.f32 %v1329_v48 }
 0x724   :  { %v1460_v49 = vpop.eup %1459 }
 0x725   :  { %v1462_v50 = vpop.eup %1461  ;;  %v517_v51 = vadd.f32 1.0, %v1460_v49 }
 0x726   :  { %v518_v52 = vadd.f32 1.0, %v1462_v50 }
 0x727   :  { %1463 = vrcp.f32 %v517_v51 }
 0x728   :  { %1465 = vrcp.f32 %v518_v52 }
 0x734   :  { %v1464_v53 = vpop.eup %1463 }
 0x735   :  { %v1466_v54 = vpop.eup %1465  ;;  %v523_v56 = vmul.f32 2.0, %v1464_v53  ;;  %v525_v2 = vmul.f32 %v1464_v53, %v1783_v63 }
 0x736   :  { %v550_v57 = vmul.f32 2.0, %v1466_v54  ;;  %v552_v3 = vmul.f32 %v1466_v54, %v1785_v1 }
 0x737   :  { %v1330_v58 = vadd.f32 -1.0, %v523_v56 }
 0x738   :  { %v1333_v40 = vadd.f32 -1.0, %v550_v57 }
 0x739   :  { %527 = vrot.lane.b32.xlu0 %v1330_v58, %s1572_s22 }
 0x73a   :  { %554 = vrot.lane.b32.xlu1 %v1333_v40, %s1572_s22 }
 0x7ab   :  { %v528_v59 = vpop.permute.xlu0 %527 }
 0x7ac   :  { %v555_v60 = vpop.permute.xlu1 %554  ;;  %v530_v61 = vmul.f32 %v1464_v53, %v528_v59 }
 0x7ad   :  { %v557_v62 = vmul.f32 %v1466_v54, %v555_v60 }
 0x7ae   :  { %532 = vrot.lane.b32.xlu0 %v530_v61, %s1572_s22 }
 0x7af   :  { %559 = vrot.lane.b32.xlu1 %v557_v62, %s1572_s22 }
 0x820   :  { %v533_v4 = vpop.permute.xlu0 %532 }
 0x821   :  { %v560_v8 = vpop.permute.xlu1 %559  ;;  %v1813_v10 = vadd.f32 %v533_v4, %v525_v2 }
 0x822   :  { %v1815_v11 = vadd.f32 %v560_v8, %v552_v3 }
 0x823   :  { %v1331_v13 = vmul.f32 -2.0, %v1813_v10 }
 0x824   :  { %v1334_v16 = vmul.f32 -2.0, %v1815_v11 }
 0x825   :  { %v538_v55 = vmul.f32 1.442695, %v1331_v13 }
 0x826   :  { %v565_v18 = vmul.f32 1.442695, %v1334_v16 }
 0x827   :  { %1467 = vpow2.f32 %v538_v55 }
 0x828   :  { %1469 = vpow2.f32 %v565_v18 }
 0x834   :  { %v1468_v20 = vpop.eup %1467 }
 0x835   :  { %v1470_v21 = vpop.eup %1469  ;;  %v540_v22 = vadd.f32 1.0, %v1468_v20 }
 0x836   :  { %v567_v63 = vadd.f32 1.0, %v1470_v21 }
 0x837   :  { %1471 = vrcp.f32 %v540_v22 }
 0x838   :  { %1473 = vrcp.f32 %v567_v63 }
 0x844   :  { %v1472_v1 = vpop.eup %1471 }
 0x845   :  { %v1474_v23 = vpop.eup %1473  ;;  %v543_v25 = vmul.f32 2.0, %v1472_v1 }
 0x846   :  { %v570_v26 = vmul.f32 2.0, %v1474_v23 }
 0x847   :  { %v1332_v24 = vadd.f32 -1.0, %v543_v25 }
 0x848   :  { %v1335_v30 = vadd.f32 -1.0, %v570_v26 }
 0x849   :  { %546 = vrot.lane.b32.xlu0 %v1332_v24, %s1572_s22 }
 0x84a   :  { %573 = vrot.lane.b32.xlu1 %v1335_v30, %s1572_s22 }
 0x8bb   :  { %v547_v33 = vpop.permute.xlu0 %546 }
 0x8bc   :  { %v574_v34 = vpop.permute.xlu1 %573  ;;  %v549_v36 = vmul.f32 %v1464_v53, %v547_v33 }
 0x8bd   :  { %v576_v39 = vmul.f32 %v1466_v54, %v574_v34 }
 0x8be   :  { %v577_v41 = vpack.c.bf16 %v549_v36, %v549_v36 }
 0x8bf   :  { %v578_v42 = vpack.c.bf16 %v576_v39, %v576_v39 }
 0x8c0   :  { %580 = vrot.lane.b32.xlu0 %v577_v41, %s1573_s30 }
 0x8c1   :  { %583 = vrot.lane.b32.xlu1 %v578_v42, %s1574_s0 }
 0x932   :  { %v581_v43 = vpop.permute.xlu0 %580 }
 0x933   :  { %v584_v44 = vpop.permute.xlu1 %583 }
 0x934   :  { %v587_v45 = vsel %vm207_vm10, %v581_v43, %v584_v44 }
 0x935   :  { %1336 = vmatmul.mubr.msk.bf16.vlgmr.msra.gmra.mxu0 %vm260_vm11, %v587_v45 }
 0x936   :  { %843 = vmatpush1.bf16.msra.mxu0 %v1622_v6  ;;  %866 = vmatprep.mubr.bf16.mxu0 %v1570_v0 }
 0x937   :  { %844 = vmatprep.subr.bf16.mxu0 %v1628_v7 }
 0x93a   :  { %845 = vmatpush1.bf16.msra.mxu0 %v1637_v9 }
 0x93b   :  { %846 = vmatprep.subr.bf16.mxu0 %v1647_v12 }
 0x93e   :  { %847 = vmatpush1.bf16.msra.mxu0 %v1656_v14 }
 0x93f   :  { %848 = vmatprep.subr.bf16.mxu0 %v1662_v15 }
 0x942   :  { %849 = vmatpush1.bf16.msra.mxu0 %v1671_v17 }
 0x943   :  { %1086 = vmatprep.subr.bf16.mxu0 %v1617_v5 }
 0x9f5   :  { %v624_v46 = vpop.f32.mrf.mxu0 }
 0x9f6   :  { %v625_v35 = vadd.f32 %v624_v46, %v1716_v38 }
 0x9f7   :  { %v626_v47 = vpop.f32.mrf.mxu0 }
 0x9f8   :  { %v632_v48 = vadd.f32 %v1762_v19, %v625_v35  ;;  %v627_v37 = vadd.f32 %v626_v47, %v1774_v32 }
 0x9f9   :  { %v628_v49 = vpop.f32.mrf.mxu0 }
 0x9fa   :  { %v1337_v50 = vmul.f32 -1.442695, %v632_v48  ;;  %v1338_v51 = vmul.f32 -1.442695, %v627_v37 }
 0x9fb   :  { %v629_v52 = vpop.f32.mrf.mxu0 }
 0x9fc   :  { %1475 = vpow2.f32 %v1337_v50 }
 0x9fd   :  { %1477 = vpow2.f32 %v1338_v51 }
 0xa09   :  { %v1476_v53 = vpop.eup %1475 }
 0xa0a   :  { %v1478_v54 = vpop.eup %1477  ;;  %v639_v56 = vadd.f32 1.0, %v1476_v53 }
 0xa0b   :  { %v640_v57 = vadd.f32 1.0, %v1478_v54 }
 0xa0c   :  { %1479 = vrcp.f32 %v639_v56 }
 0xa0d   :  { %1481 = vrcp.f32 %v640_v57 }
 0xa19   :  { %v1480_v58 = vpop.eup %1479 }
 0xa1a   :  { %v1482_v40 = vpop.eup %1481  ;;  %v645_v59 = vmul.f32 2.0, %v1480_v58  ;;  %v647_v8 = vmul.f32 %v1480_v58, %v1813_v10 }
 0xa1b   :  { %v672_v60 = vmul.f32 2.0, %v1482_v40  ;;  %v674_v13 = vmul.f32 %v1482_v40, %v1815_v11 }
 0xa1c   :  { %v1339_v61 = vadd.f32 -1.0, %v645_v59 }
 0xa1d   :  { %v1342_v19 = vadd.f32 -1.0, %v672_v60 }
 0xa1e   :  { %649 = vrot.lane.b32.xlu0 %v1339_v61, %s1572_s22 }
 0xa1f   :  { %676 = vrot.lane.b32.xlu1 %v1342_v19, %s1572_s22 }
 0xa90   :  { %v650_v62 = vpop.permute.xlu0 %649 }
 0xa91   :  { %v677_v2 = vpop.permute.xlu1 %676  ;;  %v652_v3 = vmul.f32 %v1480_v58, %v650_v62 }
 0xa92   :  { %v679_v4 = vmul.f32 %v1482_v40, %v677_v2 }
 0xa93   :  { %654 = vrot.lane.b32.xlu0 %v652_v3, %s1572_s22 }
 0xa94   :  { %681 = vrot.lane.b32.xlu1 %v679_v4, %s1572_s22 }
 0xb05   :  { %v655_v16 = vpop.permute.xlu0 %654 }
 0xb06   :  { %v682_v55 = vpop.permute.xlu1 %681  ;;  %v1843_v18 = vadd.f32 %v655_v16, %v647_v8 }
 0xb07   :  { %v1845_v20 = vadd.f32 %v682_v55, %v674_v13 }
 0xb08   :  { %v1340_v21 = vmul.f32 -2.0, %v1843_v18 }
 0xb09   :  { %v1343_v22 = vmul.f32 -2.0, %v1845_v20 }
 0xb0a   :  { %v660_v63 = vmul.f32 1.442695, %v1340_v21 }
 0xb0b   :  { %v687_v1 = vmul.f32 1.442695, %v1343_v22 }
 0xb0c   :  { %1483 = vpow2.f32 %v660_v63 }
 0xb0d   :  { %1485 = vpow2.f32 %v687_v1 }
 0xb19   :  { %v1484_v23 = vpop.eup %1483 }
 0xb1a   :  { %v1486_v25 = vpop.eup %1485  ;;  %v662_v26 = vadd.f32 1.0, %v1484_v23 }
 0xb1b   :  { %v689_v10 = vadd.f32 1.0, %v1486_v25 }
 0xb1c   :  { %1487 = vrcp.f32 %v662_v26 }
 0xb1d   :  { %1489 = vrcp.f32 %v689_v10 }
 0xb29   :  { %v1488_v11 = vpop.eup %1487 }
 0xb2a   :  { %v1490_v24 = vpop.eup %1489  ;;  %v665_v30 = vmul.f32 2.0, %v1488_v11 }
 0xb2b   :  { %v692_v33 = vmul.f32 2.0, %v1490_v24 }
 0xb2c   :  { %v1341_v34 = vadd.f32 -1.0, %v665_v30 }
 0xb2d   :  { %v1344_v36 = vadd.f32 -1.0, %v692_v33 }
 0xb2e   :  { %668 = vrot.lane.b32.xlu0 %v1341_v34, %s1572_s22 }
 0xb2f   :  { %695 = vrot.lane.b32.xlu1 %v1344_v36, %s1572_s22 }
 0xba0   :  { %v669_v39 = vpop.permute.xlu0 %668 }
 0xba1   :  { %v696_v41 = vpop.permute.xlu1 %695  ;;  %v671_v42 = vmul.f32 %v1480_v58, %v669_v39 }
 0xba2   :  { %v698_v43 = vmul.f32 %v1482_v40, %v696_v41 }
 0xba3   :  { %v699_v44 = vpack.c.bf16 %v671_v42, %v671_v42 }
 0xba4   :  { %v700_v45 = vpack.c.bf16 %v698_v43, %v698_v43 }
 0xba5   :  { %702 = vrot.lane.b32.xlu0 %v699_v44, %s1573_s30 }
 0xba6   :  { %705 = vrot.lane.b32.xlu1 %v700_v45, %s1574_s0 }
 0xc17   :  { %v703_v46 = vpop.permute.xlu0 %702 }
 0xc18   :  { %v706_v35 = vpop.permute.xlu1 %705 }
 0xc19   :  { %v709_v47 = vsel %vm207_vm10, %v703_v46, %v706_v35 }
 0xc1a   :  { %1345 = vmatmul.mubr.msk.bf16.vlgmr.msra.gmra.mxu1 %vm260_vm11, %v709_v47 }
 0xc1b   :  { %965 = vmatpush1.bf16.msra.mxu1 %v1622_v6  ;;  %988 = vmatprep.mubr.bf16.mxu1 %v1570_v0 }
 0xc1c   :  { %966 = vmatprep.subr.bf16.mxu1 %v1628_v7 }
 0xc1f   :  { %967 = vmatpush1.bf16.msra.mxu1 %v1637_v9 }
 0xc20   :  { %968 = vmatprep.subr.bf16.mxu1 %v1647_v12 }
 0xc23   :  { %969 = vmatpush1.bf16.msra.mxu1 %v1656_v14 }
 0xc24   :  { %970 = vmatprep.subr.bf16.mxu1 %v1662_v15 }
 0xc27   :  { %971 = vmatpush1.bf16.msra.mxu1 %v1671_v17 }
 0xc28   :  { %1208 = vmatprep.subr.bf16.mxu1 %v1617_v5 }
 0xcda   :  { %v746_v48 = vpop.f32.mrf.mxu1 }
 0xcdb   :  { %v747_v37 = vadd.f32 %v746_v48, %v1716_v38 }
 0xcdc   :  { %v748_v49 = vpop.f32.mrf.mxu1 }
 0xcdd   :  { %v754_v50 = vadd.f32 %v747_v37, %v1766_v28  ;;  %v749_v51 = vadd.f32 %v748_v49, %v1774_v32 }
 0xcde   :  { %v750_v52 = vpop.f32.mrf.mxu1 }
 0xcdf   :  { %v1346_v53 = vmul.f32 -1.442695, %v754_v50  ;;  %v1347_v54 = vmul.f32 -1.442695, %v749_v51 }
 0xce0   :  { %v751_v56 = vpop.f32.mrf.mxu1 }
 0xce1   :  { %1491 = vpow2.f32 %v1346_v53 }
 0xce2   :  { %1493 = vpow2.f32 %v1347_v54 }
 0xcee   :  { %v1492_v57 = vpop.eup %1491 }
 0xcef   :  { %v1494_v58 = vpop.eup %1493  ;;  %v761_v40 = vadd.f32 1.0, %v1492_v57 }
 0xcf0   :  { %v762_v59 = vadd.f32 1.0, %v1494_v58 }
 0xcf1   :  { %1495 = vrcp.f32 %v761_v40 }
 0xcf2   :  { %1497 = vrcp.f32 %v762_v59 }
 0xcfe   :  { %v1496_v5 = vpop.eup %1495 }
 0xcff   :  { %v1498_v60 = vpop.eup %1497  ;;  %v767_v61 = vmul.f32 2.0, %v1496_v5  ;;  %v769_v13 = vmul.f32 %v1496_v5, %v1843_v18 }
 0xd00   :  { %v794_v19 = vmul.f32 2.0, %v1498_v60  ;;  %v796_v16 = vmul.f32 %v1498_v60, %v1845_v20 }
 0xd01   :  { %v1348_v62 = vadd.f32 -1.0, %v767_v61 }
 0xd02   :  { %v1351_v28 = vadd.f32 -1.0, %v794_v19 }
 0xd03   :  { %771 = vrot.lane.b32.xlu0 %v1348_v62, %s1572_s22 }
 0xd04   :  { %798 = vrot.lane.b32.xlu1 %v1351_v28, %s1572_s22 }
 0xd75   :  { %v772_v2 = vpop.permute.xlu0 %771 }
 0xd76   :  { %v799_v3 = vpop.permute.xlu1 %798  ;;  %v774_v4 = vmul.f32 %v1496_v5, %v772_v2 }
 0xd77   :  { %v801_v8 = vmul.f32 %v1498_v60, %v799_v3 }
 0xd78   :  { %776 = vrot.lane.b32.xlu0 %v774_v4, %s1572_s22 }
 0xd79   :  { %803 = vrot.lane.b32.xlu1 %v801_v8, %s1572_s22 }
 0xdea   :  { %v777_v55 = vpop.permute.xlu0 %776 }
 0xdeb   :  { %v804_v21 = vpop.permute.xlu1 %803  ;;  %v1873_v22 = vadd.f32 %v777_v55, %v769_v13 }
 0xdec   :  { %v1875_v63 = vadd.f32 %v804_v21, %v796_v16 }
 0xded   :  { %v1349_v1 = vmul.f32 -2.0, %v1873_v22 }
 0xdee   :  { %v1352_v23 = vmul.f32 -2.0, %v1875_v63 }
 0xdef   :  { %v782_v25 = vmul.f32 1.442695, %v1349_v1 }
 0xdf0   :  { %v809_v26 = vmul.f32 1.442695, %v1352_v23 }
 0xdf1   :  { %1499 = vpow2.f32 %v782_v25 }
 0xdf2   :  { %1501 = vpow2.f32 %v809_v26 }
 0xdfe   :  { %v1500_v10 = vpop.eup %1499 }
 0xdff   :  { %v1502_v11 = vpop.eup %1501  ;;  %v784_v24 = vadd.f32 1.0, %v1500_v10 }
 0xe00   :  { %v811_v18 = vadd.f32 1.0, %v1502_v11 }
 0xe01   :  { %1503 = vrcp.f32 %v784_v24 }
 0xe02   :  { %1505 = vrcp.f32 %v811_v18 }
 0xe0e   :  { %v1504_v20 = vpop.eup %1503 }
 0xe0f   :  { %v1506_v30 = vpop.eup %1505  ;;  %v787_v33 = vmul.f32 2.0, %v1504_v20 }
 0xe10   :  { %v814_v34 = vmul.f32 2.0, %v1506_v30 }
 0xe11   :  { %v1350_v36 = vadd.f32 -1.0, %v787_v33 }
 0xe12   :  { %v1353_v39 = vadd.f32 -1.0, %v814_v34 }
 0xe13   :  { %790 = vrot.lane.b32.xlu0 %v1350_v36, %s1572_s22 }
 0xe14   :  { %817 = vrot.lane.b32.xlu1 %v1353_v39, %s1572_s22 }
 0xe85   :  { %v791_v41 = vpop.permute.xlu0 %790 }
 0xe86   :  { %v818_v42 = vpop.permute.xlu1 %817  ;;  %v793_v43 = vmul.f32 %v1496_v5, %v791_v41 }
 0xe87   :  { %v820_v44 = vmul.f32 %v1498_v60, %v818_v42 }
 0xe88   :  { %v821_v45 = vpack.c.bf16 %v793_v43, %v793_v43  ;;  %v1563_v43 = vld [vmem:[%s1989_s2 + $0x30] ss:$8 sps:$4 sm:$0xff]  }
 0xe89   :  { %v822_v46 = vpack.c.bf16 %v820_v44, %v820_v44  ;;  %v1564_v44 = vld [vmem:[%s1989_s2 + $0x24] ss:$8 sps:$4 sm:$0xff]  }
 0xe8a   :  { %824 = vrot.lane.b32.xlu0 %v821_v45, %s1573_s30  ;;  %v1565_v45 = vld [vmem:[%s1989_s2 + $0x20] ss:$8 sps:$4 sm:$0xff]  }
 0xe8b   :  { %827 = vrot.lane.b32.xlu1 %v822_v46, %s1574_s0  ;;  %v1566_v46 = vld [vmem:[%s1989_s2 + $0x14] ss:$8 sps:$4 sm:$0xff]  }
 0xefc   :  { %v825_v35 = vpop.permute.xlu0 %824 }
 0xefd   :  { %v828_v47 = vpop.permute.xlu1 %827 }
 0xefe   :  { %v831_v48 = vsel %vm207_vm10, %v825_v35, %v828_v47  ;;  %v1567_v35 = vld [vmem:[%s1989_s2 + $0x10] ss:$8 sps:$4 sm:$0xff]   ;;  %v1569_v47 = vld [vmem:[%s1989_s2] ss:$8 sps:$4 sm:$0xff]  }
 0xeff   :  { %1354 = vmatmul.mubr.msk.bf16.vlgmr.msra.gmra.mxu0 %vm260_vm11, %v831_v48 }
 0xf00   :  { %1087 = vmatpush1.bf16.msra.mxu0 %v1622_v6  ;;  %1110 = vmatprep.mubr.bf16.mxu0 %v1570_v0 }
 0xf01   :  { %1088 = vmatprep.subr.bf16.mxu0 %v1628_v7 }
 0xf04   :  { %1089 = vmatpush1.bf16.msra.mxu0 %v1637_v9 }
 0xf05   :  { %1090 = vmatprep.subr.bf16.mxu0 %v1647_v12 }
 0xf08   :  { %1091 = vmatpush1.bf16.msra.mxu0 %v1656_v14 }
 0xf09   :  { %1092 = vmatprep.subr.bf16.mxu0 %v1662_v15 }
 0xf0c   :  { %1093 = vmatpush1.bf16.msra.mxu0 %v1671_v17 }
 0xfbf   :  { %v868_v37 = vpop.f32.mrf.mxu0 }
 0xfc0   :  { %v869_v49 = vadd.f32 %v868_v37, %v1716_v38 }
 0xfc1   :  { %v870_v50 = vpop.f32.mrf.mxu0 }
 0xfc2   :  { %v876_v6 = vadd.f32 %v869_v49, %v1771_v31  ;;  %v871_v51 = vadd.f32 %v870_v50, %v1774_v32 }
 0xfc3   :  { %v872_v52 = vpop.f32.mrf.mxu0 }
 0xfc4   :  { %v1355_v7 = vmul.f32 -1.442695, %v876_v6  ;;  %v1356_v53 = vmul.f32 -1.442695, %v871_v51 }
 0xfc5   :  { %v873_v9 = vpop.f32.mrf.mxu0 }
 0xfc6   :  { %1507 = vpow2.f32 %v1355_v7 }
 0xfc7   :  { %1509 = vpow2.f32 %v1356_v53 }
 0xfd3   :  { %v1508_v12 = vpop.eup %1507 }
 0xfd4   :  { %v1510_v14 = vpop.eup %1509  ;;  %v883_v54 = vadd.f32 1.0, %v1508_v12 }
 0xfd5   :  { %v884_v15 = vadd.f32 1.0, %v1510_v14 }
 0xfd6   :  { %1511 = vrcp.f32 %v883_v54 }
 0xfd7   :  { %1513 = vrcp.f32 %v884_v15 }
 0xfe3   :  { %v1512_v17 = vpop.eup %1511 }
 0xfe4   :  { %v1514_v56 = vpop.eup %1513  ;;  %v889_v57 = vmul.f32 2.0, %v1512_v17  ;;  %v891_v19 = vmul.f32 %v1512_v17, %v1873_v22 }
 0xfe5   :  { %v916_v58 = vmul.f32 2.0, %v1514_v56  ;;  %v918_v62 = vmul.f32 %v1514_v56, %v1875_v63 }
 0xfe6   :  { %v1357_v40 = vadd.f32 -1.0, %v889_v57 }
 0xfe7   :  { %v1360_v31 = vadd.f32 -1.0, %v916_v58 }
 0xfe8   :  { %893 = vrot.lane.b32.xlu0 %v1357_v40, %s1572_s22 }
 0xfe9   :  { %920 = vrot.lane.b32.xlu1 %v1360_v31, %s1572_s22 }
0x105a   :  { %v894_v59 = vpop.permute.xlu0 %893 }
0x105b   :  { %v921_v5 = vpop.permute.xlu1 %920  ;;  %v896_v60 = vmul.f32 %v1512_v17, %v894_v59 }
0x105c   :  { %v923_v61 = vmul.f32 %v1514_v56, %v921_v5 }
0x105d   :  { %898 = vrot.lane.b32.xlu0 %v896_v60, %s1572_s22 }
0x105e   :  { %925 = vrot.lane.b32.xlu1 %v923_v61, %s1572_s22 }
0x10cf   :  { %v899_v28 = vpop.permute.xlu0 %898 }
0x10d0   :  { %v926_v2 = vpop.permute.xlu1 %925  ;;  %v1902_v3 = vadd.f32 %v899_v28, %v891_v19 }
0x10d1   :  { %v1904_v4 = vadd.f32 %v926_v2, %v918_v62 }
0x10d2   :  { %v1358_v8 = vmul.f32 -2.0, %v1902_v3 }
0x10d3   :  { %v1361_v13 = vmul.f32 -2.0, %v1904_v4 }
0x10d4   :  { %v904_v16 = vmul.f32 1.442695, %v1358_v8 }
0x10d5   :  { %v931_v55 = vmul.f32 1.442695, %v1361_v13 }
0x10d6   :  { %1515 = vpow2.f32 %v904_v16 }
0x10d7   :  { %1517 = vpow2.f32 %v931_v55 }
0x10e3   :  { %v1516_v21 = vpop.eup %1515 }
0x10e4   :  { %v1518_v1 = vpop.eup %1517  ;;  %v906_v23 = vadd.f32 1.0, %v1516_v21 }
0x10e5   :  { %v933_v22 = vadd.f32 1.0, %v1518_v1 }
0x10e6   :  { %1519 = vrcp.f32 %v906_v23 }
0x10e7   :  { %1521 = vrcp.f32 %v933_v22 }
0x10f3   :  { %v1520_v63 = vpop.eup %1519 }
0x10f4   :  { %v1522_v25 = vpop.eup %1521  ;;  %v909_v26 = vmul.f32 2.0, %v1520_v63 }
0x10f5   :  { %v936_v10 = vmul.f32 2.0, %v1522_v25 }
0x10f6   :  { %v1359_v11 = vadd.f32 -1.0, %v909_v26 }
0x10f7   :  { %v1362_v24 = vadd.f32 -1.0, %v936_v10 }
0x10f8   :  { %912 = vrot.lane.b32.xlu0 %v1359_v11, %s1572_s22 }
0x10f9   :  { %939 = vrot.lane.b32.xlu1 %v1362_v24, %s1572_s22 }
0x116a   :  { %v913_v18 = vpop.permute.xlu0 %912 }
0x116b   :  { %v940_v20 = vpop.permute.xlu1 %939  ;;  %v915_v30 = vmul.f32 %v1512_v17, %v913_v18 }
0x116c   :  { %v942_v33 = vmul.f32 %v1514_v56, %v940_v20 }
0x116d   :  { %v943_v34 = vpack.c.bf16 %v915_v30, %v915_v30 }
0x116e   :  { %v944_v36 = vpack.c.bf16 %v942_v33, %v942_v33 }
0x116f   :  { %946 = vrot.lane.b32.xlu0 %v943_v34, %s1573_s30 }
0x1170   :  { %949 = vrot.lane.b32.xlu1 %v944_v36, %s1574_s0 }
0x11e1   :  { %v947_v39 = vpop.permute.xlu0 %946 }
0x11e2   :  { %v950_v41 = vpop.permute.xlu1 %949 }
0x11e3   :  { %v953_v42 = vsel %vm207_vm10, %v947_v39, %v950_v41 }
0x11e4   :  { %1363 = vmatmul.mubr.msk.bf16.vlgmr.msra.gmra.mxu1 %vm260_vm11, %v953_v42 }
0x11e5   :  { %1209 = vmatpush1.bf16.msra.mxu1 %v1563_v43  ;;  %1232 = vmatprep.mubr.bf16.mxu1 %v1570_v0  ;;  %v1568_v0 = vld [vmem:[%s1989_s2 + $0x4] ss:$8 sps:$4 sm:$0xff]  }
0x11e6   :  { %1210 = vmatprep.subr.bf16.mxu1 %v1564_v44 }
0x11e9   :  { %1211 = vmatpush1.bf16.msra.mxu1 %v1565_v45 }
0x11ea   :  { %1212 = vmatprep.subr.bf16.mxu1 %v1566_v46 }
0x11ed   :  { %1213 = vmatpush1.bf16.msra.mxu1 %v1567_v35 }
0x11ee   :  { %1214 = vmatprep.subr.bf16.mxu1 %v1568_v0 }
0x11f1   :  { %1215 = vmatpush1.bf16.msra.mxu1 %v1569_v47 }
0x12a4   :  { %v990_v48 = vpop.f32.mrf.mxu1 }
0x12a5   :  { %v991_v37 = vadd.f32 %v990_v48, %v1716_v38 }
0x12a6   :  { %v992_v49 = vpop.f32.mrf.mxu1 }
0x12a7   :  { %v998_v50 = vadd.f32 %v1764_v27, %v991_v37  ;;  %v993_v6 = vadd.f32 %v992_v49, %v1774_v32 }
0x12a8   :  { %v994_v51 = vpop.f32.mrf.mxu1 }
0x12a9   :  { %v1364_v52 = vmul.f32 -1.442695, %v998_v50  ;;  %v1365_v7 = vmul.f32 -1.442695, %v993_v6 }
0x12aa   :  { %v995_v53 = vpop.f32.mrf.mxu1 }
0x12ab   :  { %1523 = vpow2.f32 %v1364_v52 }
0x12ac   :  { %1525 = vpow2.f32 %v1365_v7 }
0x12b8   :  { %v1524_v9 = vpop.eup %1523 }
0x12b9   :  { %v1526_v12 = vpop.eup %1525  ;;  %v1005_v14 = vadd.f32 1.0, %v1524_v9 }
0x12ba   :  { %v1006_v54 = vadd.f32 1.0, %v1526_v12 }
0x12bb   :  { %1527 = vrcp.f32 %v1005_v14 }
0x12bc   :  { %1529 = vrcp.f32 %v1006_v54 }
0x12c8   :  { %v1528_v15 = vpop.eup %1527 }
0x12c9   :  { %v1530_v17 = vpop.eup %1529  ;;  %v1011_v56 = vmul.f32 2.0, %v1528_v15  ;;  %v1013_v60 = vmul.f32 %v1528_v15, %v1902_v3 }
0x12ca   :  { %v1038_v57 = vmul.f32 2.0, %v1530_v17  ;;  %v1040_v61 = vmul.f32 %v1530_v17, %v1904_v4 }
0x12cb   :  { %v1366_v58 = vadd.f32 -1.0, %v1011_v56 }
0x12cc   :  { %v1369_v27 = vadd.f32 -1.0, %v1038_v57 }
0x12cd   :  { %1015 = vrot.lane.b32.xlu0 %v1366_v58, %s1572_s22 }
0x12ce   :  { %1042 = vrot.lane.b32.xlu1 %v1369_v27, %s1572_s22 }
0x133f   :  { %v1016_v40 = vpop.permute.xlu0 %1015 }
0x1340   :  { %v1043_v31 = vpop.permute.xlu1 %1042  ;;  %v1018_v59 = vmul.f32 %v1528_v15, %v1016_v40 }
0x1341   :  { %v1045_v5 = vmul.f32 %v1530_v17, %v1043_v31 }
0x1342   :  { %1020 = vrot.lane.b32.xlu0 %v1018_v59, %s1572_s22 }
0x1343   :  { %1047 = vrot.lane.b32.xlu1 %v1045_v5, %s1572_s22 }
0x13b4   :  { %v1021_v19 = vpop.permute.xlu0 %1020 }
0x13b5   :  { %v1048_v62 = vpop.permute.xlu1 %1047  ;;  %v1945_v28 = vadd.f32 %v1021_v19, %v1013_v60 }
0x13b6   :  { %v1947_v2 = vadd.f32 %v1048_v62, %v1040_v61 }
0x13b7   :  { %v1367_v8 = vmul.f32 -2.0, %v1945_v28 }
0x13b8   :  { %v1370_v13 = vmul.f32 -2.0, %v1947_v2 }
0x13b9   :  { %v1026_v16 = vmul.f32 1.442695, %v1367_v8 }
0x13ba   :  { %v1053_v55 = vmul.f32 1.442695, %v1370_v13 }
0x13bb   :  { %1531 = vpow2.f32 %v1026_v16 }
0x13bc   :  { %1533 = vpow2.f32 %v1053_v55 }
0x13c8   :  { %v1532_v21 = vpop.eup %1531 }
0x13c9   :  { %v1534_v1 = vpop.eup %1533  ;;  %v1028_v23 = vadd.f32 1.0, %v1532_v21 }
0x13ca   :  { %v1055_v3 = vadd.f32 1.0, %v1534_v1 }
0x13cb   :  { %1535 = vrcp.f32 %v1028_v23 }
0x13cc   :  { %1537 = vrcp.f32 %v1055_v3 }
0x13d8   :  { %v1536_v4 = vpop.eup %1535 }
0x13d9   :  { %v1538_v22 = vpop.eup %1537  ;;  %v1031_v63 = vmul.f32 2.0, %v1536_v4 }
0x13da   :  { %v1058_v25 = vmul.f32 2.0, %v1538_v22 }
0x13db   :  { %v1368_v26 = vadd.f32 -1.0, %v1031_v63 }
0x13dc   :  { %v1371_v10 = vadd.f32 -1.0, %v1058_v25 }
0x13dd   :  { %1034 = vrot.lane.b32.xlu0 %v1368_v26, %s1572_s22 }
0x13de   :  { %1061 = vrot.lane.b32.xlu1 %v1371_v10, %s1572_s22 }
0x144f   :  { %v1035_v11 = vpop.permute.xlu0 %1034 }
0x1450   :  { %v1062_v24 = vpop.permute.xlu1 %1061  ;;  %v1037_v18 = vmul.f32 %v1528_v15, %v1035_v11 }
0x1451   :  { %v1064_v20 = vmul.f32 %v1530_v17, %v1062_v24 }
0x1452   :  { %v1065_v30 = vpack.c.bf16 %v1037_v18, %v1037_v18 }
0x1453   :  { %v1066_v33 = vpack.c.bf16 %v1064_v20, %v1064_v20 }
0x1454   :  { %1068 = vrot.lane.b32.xlu0 %v1065_v30, %s1573_s30 }
0x1455   :  { %1071 = vrot.lane.b32.xlu1 %v1066_v33, %s1574_s0 }
0x14c6   :  { %v1069_v34 = vpop.permute.xlu0 %1068 }
0x14c7   :  { %v1072_v36 = vpop.permute.xlu1 %1071 }
0x14c8   :  { %v1075_v39 = vsel %vm207_vm10, %v1069_v34, %v1072_v36 }
0x14c9   :  { %1372 = vmatmul.mubr.msk.bf16.vlgmr.msra.gmra.mxu0 %vm260_vm11, %v1075_v39 }
0x1589   :  { %v1112_v41 = vpop.f32.mrf.mxu0 }
0x158a   :  { %v1113_v42 = vadd.f32 %v1112_v41, %v1716_v38 }
0x158b   :  { %v1114_v43 = vpop.f32.mrf.mxu0 }
0x158c   :  { %v1120_v44 = vadd.f32 %v1768_v29, %v1113_v42  ;;  %v1115_v45 = vadd.f32 %v1114_v43, %v1774_v32 }
0x158d   :  { %v1116_v46 = vpop.f32.mrf.mxu0 }
0x158e   :  { %v1373_v35 = vmul.f32 -1.442695, %v1120_v44  ;;  %v1374_v0 = vmul.f32 -1.442695, %v1115_v45 }
0x158f   :  { %v1117_v47 = vpop.f32.mrf.mxu0 }
0x1590   :  { %1539 = vpow2.f32 %v1373_v35 }
0x1591   :  { %1541 = vpow2.f32 %v1374_v0 }
0x159d   :  { %v1540_v48 = vpop.eup %1539 }
0x159e   :  { %v1542_v37 = vpop.eup %1541  ;;  %v1127_v49 = vadd.f32 1.0, %v1540_v48 }
0x159f   :  { %v1128_v50 = vadd.f32 1.0, %v1542_v37 }
0x15a0   :  { %1543 = vrcp.f32 %v1127_v49 }
0x15a1   :  { %1545 = vrcp.f32 %v1128_v50 }
0x15ad   :  { %v1544_v6 = vpop.eup %1543 }
0x15ae   :  { %v1546_v51 = vpop.eup %1545  ;;  %v1133_v38 = vmul.f32 2.0, %v1544_v6  ;;  %v1135_v54 = vmul.f32 %v1544_v6, %v1945_v28 }
0x15af   :  { %v1160_v52 = vmul.f32 2.0, %v1546_v51  ;;  %v1162_v15 = vmul.f32 %v1546_v51, %v1947_v2 }
0x15b0   :  { %v1375_v7 = vadd.f32 -1.0, %v1133_v38 }
0x15b1   :  { %v1378_v29 = vadd.f32 -1.0, %v1160_v52 }
0x15b2   :  { %1137 = vrot.lane.b32.xlu0 %v1375_v7, %s1572_s22 }
0x15b3   :  { %1164 = vrot.lane.b32.xlu1 %v1378_v29, %s1572_s22 }
0x1624   :  { %v1138_v53 = vpop.permute.xlu0 %1137 }
0x1625   :  { %v1165_v9 = vpop.permute.xlu1 %1164  ;;  %v1140_v12 = vmul.f32 %v1544_v6, %v1138_v53 }
0x1626   :  { %v1167_v14 = vmul.f32 %v1546_v51, %v1165_v9 }
0x1627   :  { %1142 = vrot.lane.b32.xlu0 %v1140_v12, %s1572_s22 }
0x1628   :  { %1169 = vrot.lane.b32.xlu1 %v1167_v14, %s1572_s22 }
0x1699   :  { %v1143_v17 = vpop.permute.xlu0 %1142 }
0x169a   :  { %v1170_v56 = vpop.permute.xlu1 %1169  ;;  %v1145_v57 = vadd.f32 %v1143_v17, %v1135_v54 }
0x169b   :  { %v1172_v58 = vadd.f32 %v1170_v56, %v1162_v15 }
0x169c   :  { %v1376_v27 = vmul.f32 -2.0, %v1145_v57 }
0x169d   :  { %v1379_v40 = vmul.f32 -2.0, %v1172_v58 }
0x169e   :  { %v1148_v31 = vmul.f32 1.442695, %v1376_v27 }
0x169f   :  { %v1175_v59 = vmul.f32 1.442695, %v1379_v40 }
0x16a0   :  { %1547 = vpow2.f32 %v1148_v31 }
0x16a1   :  { %1549 = vpow2.f32 %v1175_v59 }
0x16ad   :  { %v1548_v5 = vpop.eup %1547 }
0x16ae   :  { %v1550_v60 = vpop.eup %1549  ;;  %v1150_v61 = vadd.f32 1.0, %v1548_v5 }
0x16af   :  { %v1177_v19 = vadd.f32 1.0, %v1550_v60 }
0x16b0   :  { %1551 = vrcp.f32 %v1150_v61 }
0x16b1   :  { %1553 = vrcp.f32 %v1177_v19 }
0x16bd   :  { %v1552_v62 = vpop.eup %1551 }
0x16be   :  { %v1554_v28 = vpop.eup %1553  ;;  %v1153_v8 = vmul.f32 2.0, %v1552_v62 }
0x16bf   :  { %v1180_v2 = vmul.f32 2.0, %v1554_v28 }
0x16c0   :  { %v1377_v13 = vadd.f32 -1.0, %v1153_v8 }
0x16c1   :  { %v1380_v16 = vadd.f32 -1.0, %v1180_v2 }
0x16c2   :  { %1156 = vrot.lane.b32.xlu0 %v1377_v13, %s1572_s22 }
0x16c3   :  { %1183 = vrot.lane.b32.xlu1 %v1380_v16, %s1572_s22 }
0x1734   :  { %v1157_v55 = vpop.permute.xlu0 %1156 }
0x1735   :  { %v1184_v21 = vpop.permute.xlu1 %1183  ;;  %v1159_v1 = vmul.f32 %v1544_v6, %v1157_v55 }
0x1736   :  { %v1186_v23 = vmul.f32 %v1546_v51, %v1184_v21 }
0x1737   :  { %v1187_v3 = vpack.c.bf16 %v1159_v1, %v1159_v1 }
0x1738   :  { %v1188_v4 = vpack.c.bf16 %v1186_v23, %v1186_v23 }
0x1739   :  { %1190 = vrot.lane.b32.xlu0 %v1187_v3, %s1573_s30 }
0x173a   :  { %1193 = vrot.lane.b32.xlu1 %v1188_v4, %s1574_s0 }
0x17ab   :  { %v1191_v22 = vpop.permute.xlu0 %1190 }
0x17ac   :  { %v1194_v63 = vpop.permute.xlu1 %1193 }
0x17ad   :  { %v1197_v25 = vsel %vm207_vm10, %v1191_v22, %v1194_v63 }
0x17ae   :  { %1381 = vmatmul.mubr.msk.bf16.vlgmr.msra.gmra.mxu1 %vm260_vm11, %v1197_v25 }
0x186e   :  { %v1234_v26 = vpop.f32.mrf.mxu1 }
0x1870   :  { %v1235_v10 = vpop.f32.mrf.mxu1 }
0x1871   :  { %v1236_v11 = vadd.f32 %v1235_v10, %v1774_v32 }
0x1872   :  { %v1237_v24 = vpop.f32.mrf.mxu1 }
0x1873   :  { %v1382_v18 = vmul.f32 -1.442695, %v1236_v11 }
0x1874   :  { %v1238_v20 = vpop.f32.mrf.mxu1 }
0x1875   :  { %1555 = vpow2.f32 %v1382_v18 }
0x1882   :  { %v1556_v30 = vpop.eup %1555 }
0x1883   :  { %v1243_v33 = vadd.f32 1.0, %v1556_v30 }
0x1885   :  { %1557 = vrcp.f32 %v1243_v33 }
0x1892   :  { %v1558_v34 = vpop.eup %1557 }
0x1893   :  { %v1246_v36 = vmul.f32 2.0, %v1558_v34  ;;  %v1248_v43 = vmul.f32 %v1558_v34, %v1172_v58 }
0x1895   :  { %v1383_v39 = vadd.f32 -1.0, %v1246_v36 }
0x1897   :  { %1250 = vrot.lane.b32.xlu0 %v1383_v39, %s1572_s22 }
0x1909   :  { %v1251_v41 = vpop.permute.xlu0 %1250 }
0x190a   :  { %v1253_v42 = vmul.f32 %v1558_v34, %v1251_v41 }
0x190c   :  { %1255 = vrot.lane.b32.xlu1 %v1253_v42, %s1572_s22 }
0x1910   :  { %1274 = vrot.lane.b32.xlu1 %v1159_v1, %s1573_s30 }
0x197e   :  { %v1256_v32 = vpop.permute.xlu1 %1255 }
0x197f   :  { %v1258_v44 = vadd.f32 %v1256_v32, %v1248_v43 }
0x1981   :  { %v1384_v45 = vmul.f32 -2.0, %v1258_v44 }
0x1982   :  { %v1275_v46 = vpop.permute.xlu1 %1274 }
0x1983   :  { %v1261_v35 = vmul.f32 1.442695, %v1384_v45  ;;  %v1277_v0 = vsel %vm207_vm10, %v1275_v46, %v1145_v57 }
0x1984   :  { %1278 = vst.msk [vmem:[%s1992_s4] sm:$0xff] %vm260_vm11, %v1277_v0 }
0x1985   :  { %1559 = vpow2.f32 %v1261_v35 }
0x1992   :  { %v1560_v47 = vpop.eup %1559 }
0x1993   :  { %v1263_v48 = vadd.f32 1.0, %v1560_v47 }
0x1995   :  { %1561 = vrcp.f32 %v1263_v48 }
0x19a2   :  { %v1562_v37 = vpop.eup %1561 }
0x19a3   :  { %v1266_v49 = vmul.f32 2.0, %v1562_v37 }
0x19a5   :  { %v1385_v50 = vadd.f32 -1.0, %v1266_v49 }
0x19a7   :  { %1269 = vrot.lane.b32.xlu0 %v1385_v50, %s1572_s22 }
0x1a19   :  { %v1270_v6 = vpop.permute.xlu0 %1269 }
0x1a1a   :  { %v1272_v51 = vmul.f32 %v1558_v34, %v1270_v6 }
0x1a1c   :  { %1280 = vrot.lane.b32.xlu0 %v1272_v51, %s1573_s30 }
0x1a8e   :  { %v1281_v38 = vpop.permute.xlu0 %1280 }
0x1a8f   :  { %v1283_v52 = vsel %vm207_vm10, %v1281_v38, %v1258_v44 }
0x1a90   :  { %1386 = vst.msk [vmem:[%s1992_s4 + $0x8] sm:$0xff] %vm260_vm11, %v1283_v52 }

</bundles_post_ra>
